<compile_context>
chip_gen: v7x
topology: tpu7x:2x2x1
jax: 0.10.0
libtpu: 0.0.40
codegen_flags: <defaults>
</compile_context>

<pallas_src>
import functools

import jax
import jax.numpy as jnp
import numpy as np
from jax import lax
from jax.experimental import pallas as pl
from jax.experimental.pallas import tpu as pltpu


def _round_up(x, m):
    return ((x + m - 1) // m) * m


def _vmem_footprint_bytes(shapes_and_dtypes):
    """Conservative VMEM bytes for blocks/scratches: last dim padded to 128 lanes,
    second-to-last to 8 sublanes."""
    total = 0
    for shape, dtype in shapes_and_dtypes:
        dims = list(shape)
        if len(dims) == 1:
            dims = [1] + dims
        dims[-1] = _round_up(dims[-1], 128)
        dims[-2] = _round_up(dims[-2], 8)
        total += int(np.prod(dims)) * np.dtype(dtype).itemsize
    return total


def _vmem_limit_bytes(per_step_bytes):
    """Scoped-VMEM limit derived from the actual block/scratch footprint (x4 for
    double-buffering + Mosaic-internal headroom), clamped to ~85% of the part's
    physical VMEM (128 MiB on v5e/v6e, 64 MiB on v7x)."""
    try:
        cap = int(pltpu.get_tpu_info().vmem_capacity_bytes)
    except Exception:
        cap = 64 * 1024 * 1024          # assume the smallest part (v7x)
    want = max(4 * per_step_bytes, 32 * 1024 * 1024)
    return int(min(want, (cap * 17) // 20))


def _down_kernel(x_ref, w1_ref, b1_ref, w2_ref, b2_ref, m_ref, out_ref,
                 p1s0, p1s1, p1s2, p2s0, p2s1, p2s2, *,
                 Hp, Wp, R, Cin, Cout, mxu_dtype, ch_first_out):
    del Wp                           # validity is encoded in the resident mask
    L = Hp * R                       # rows of the R-wide "extended" activation
    pad1 = (p1s0, p1s1, p1s2)        # conv1 input: zero-halo planes, shifted s rows
    pad2 = (p2s0, p2s1, p2s2)        # conv2 input: zero-halo planes, shifted s rows
    buf_rows = p1s0.shape[0]         # == (Hp + 2) * R; taps read rows [0, 2R + L)
    top = R + 1                      # flat offset of padded pixel (1, 1), shift 0

    # ---- re-zero only the halo border rows of every shift plane (O(R) rows).
    # Rows [0, R+1) and [L, buf_rows) cover every halo row any tap can read; the
    # interior stores below overwrite whatever part of these ranges they own, so
    # zero-first / store-second keeps all planes consistent every grid step. -----
    for planes, C in ((pad1, Cin), (pad2, Cout)):
        for ref in planes:
            ref[0:top, :] = jnp.zeros((top, C), ref.dtype)
            ref[L:buf_rows, :] = jnp.zeros((buf_rows - L, C), ref.dtype)

    # ---- 2x2 max pool (H-pair / W-pair pre-split by free wrapper reshapes).
    # Unpack to f32 once; pooling, halo stores and accumulation stay f32. --------
    xb = x_ref[0].astype(jnp.float32)                   # (Hp, 2, R, 2*Cin)
    m = jnp.maximum(xb[:, 0], xb[:, 1])                 # (Hp, R, 2*Cin)
    pooled = jnp.maximum(m[..., :Cin], m[..., Cin:])    # (Hp, R, Cin)
    pooled = pooled.reshape(L, Cin)
    # Columns >= Wp of `pooled` are exactly zero (wrapper zero W-pad), so every
    # interior store also writes the in-row halo zeros it crosses.  Plane s holds
    # the buffer shifted by s rows (plane_s[r] == flat[r + s]); the row shift is
    # paid here as at most two sublane-unaligned bulk stores (offsets R+1, R-1)
    # instead of six unaligned tap loads per conv stage.
    for s in range(3):
        pad1[s][top - s:top - s + L, :] = pooled

    mask = m_ref[...]                # (L, 1) resident 0/1 slack-column mask

    def conv3x3(planes, w_ref, b_ref):
        # One partial accumulator per kh row; bias folded into partial 0's init.
        parts = [jnp.broadcast_to(b_ref[...], (L, Cout)).astype(jnp.float32),
                 jnp.zeros((L, Cout), jnp.float32),
                 jnp.zeros((L, Cout), jnp.float32)]
        for kh in range(3):
            for kw in range(3):
                patch = planes[kw][kh * R:kh * R + L, :]      # 8-aligned window
                parts[kh] = parts[kh] + jnp.dot(
                    patch.astype(mxu_dtype), w_ref[kh * 3 + kw],
                    preferred_element_type=jnp.float32)
        return parts[0] + parts[1] + parts[2]

    # ---- conv1 + ReLU; zero the slack columns so conv2's halos stay zero. ------
    h1 = jnp.maximum(conv3x3(pad1, w1_ref, b1_ref), 0.0) * mask
    for s in range(3):
        pad2[s][top - s:top - s + L, :] = h1

    # ---- conv2 + ReLU -----------------------------------------------------------
    y = jnp.maximum(conv3x3(pad2, w2_ref, b2_ref), 0.0)
    if ch_first_out:
        # Small Cout: channels-first (Cout, L) is the lane-dense layout.
        out_ref[0] = y.T.astype(out_ref.dtype)
    else:
        # Cout >= 128: (L, Cout) is already lane-dense -> skip the XLU transpose.
        out_ref[0] = y.astype(out_ref.dtype)


def _down_pallas_impl(x_nchw, w1, b1, w2, b2, *, mxu_dtype=jnp.float32,
                      out_dtype=None):
    """Down block forward.  x_nchw: (N, Cin, H, W); w*: (Cout, C, 3, 3)."""
    N, Cin, H, W = x_nchw.shape
    Cout = w1.shape[0]
    assert H % 2 == 0 and W % 2 == 0, "MaxPool2d(2) path assumes even H and W"
    if out_dtype is None:
        out_dtype = mxu_dtype
    Hp, Wp = H // 2, W // 2
    R = _round_up(Wp + 2, 8)         # 8-aligned padded row width of the halo planes
    L = Hp * R
    buf_rows = (Hp + 2) * R          # max tap read row is exactly 2R + L == buf_rows
    ch_first_out = Cout < 128        # lane-dense output layout choice

    # Single HBM pass on the input: cast to the MXU dtype FIRST (halves the input
    # DMA bytes on the bf16 path), then NCHW -> NHWC transpose; the zero W-pad and
    # the 2x2-window split are free (contiguous) reshapes fused under jit.
    x = x_nchw.astype(mxu_dtype)
    x_nhwc = jnp.transpose(x, (0, 2, 3, 1))                          # (N,H,W,Cin)
    x_pad = jnp.pad(x_nhwc, ((0, 0), (0, 0), (0, 2 * R - W), (0, 0)))
    x_blk = x_pad.reshape(N, Hp, 2, R, 2 * Cin)

    # Conv weights -> (tap, C_in, C_out), tap = kh*3 + kw; biases -> (1, Cout) f32.
    w1_k = jnp.transpose(w1, (2, 3, 1, 0)).reshape(9, Cin, Cout).astype(mxu_dtype)
    w2_k = jnp.transpose(w2, (2, 3, 1, 0)).reshape(9, Cout, Cout).astype(mxu_dtype)
    b1_k = b1.reshape(1, Cout).astype(jnp.float32)
    b2_k = b2.reshape(1, Cout).astype(jnp.float32)

    # Resident 0/1 slack-column mask (constant index_map => loaded once), so the
    # kernel does not rebuild an iota/compare/select over (L, Cout) every step.
    mask = jnp.asarray(
        np.tile((np.arange(R) < Wp).astype(np.float32), Hp).reshape(L, 1))

    kernel = functools.partial(_down_kernel, Hp=Hp, Wp=Wp, R=R, Cin=Cin,
                               Cout=Cout, mxu_dtype=mxu_dtype,
                               ch_first_out=ch_first_out)

    if ch_first_out:
        out_shape = jax.ShapeDtypeStruct((N, Cout, L), out_dtype)
        out_spec = pl.BlockSpec((1, Cout, L), lambda n: (n, 0, 0))
    else:
        out_shape = jax.ShapeDtypeStruct((N, L, Cout), out_dtype)
        out_spec = pl.BlockSpec((1, L, Cout), lambda n: (n, 0, 0))

    per_step = _vmem_footprint_bytes([
        ((Hp, 2, R, 2 * Cin), mxu_dtype),          # input block
        (out_shape.shape[1:], out_dtype),          # output block
        ((9, Cin, Cout), mxu_dtype),               # conv1 weights
        ((9, Cout, Cout), mxu_dtype),              # conv2 weights
        ((1, Cout), jnp.float32), ((1, Cout), jnp.float32),
        ((L, 1), jnp.float32),                     # mask
        ((3, buf_rows, Cin), jnp.float32),         # conv1 halo planes
        ((3, buf_rows, Cout), jnp.float32),        # conv2 halo planes
    ])

    out_ext = pl.pallas_call(
        kernel,
        out_shape=out_shape,
        grid=(N,),
        in_specs=[
            pl.BlockSpec((1, Hp, 2, R, 2 * Cin), lambda n: (n, 0, 0, 0, 0)),
            pl.BlockSpec((9, Cin, Cout), lambda n: (0, 0, 0)),
            pl.BlockSpec((1, Cout), lambda n: (0, 0)),
            pl.BlockSpec((9, Cout, Cout), lambda n: (0, 0, 0)),
            pl.BlockSpec((1, Cout), lambda n: (0, 0)),
            pl.BlockSpec((L, 1), lambda n: (0, 0)),
        ],
        out_specs=out_spec,
        scratch_shapes=[
            pltpu.VMEM((buf_rows, Cin), jnp.float32),    # conv1 halo, shift 0
            pltpu.VMEM((buf_rows, Cin), jnp.float32),    # conv1 halo, shift 1
            pltpu.VMEM((buf_rows, Cin), jnp.float32),    # conv1 halo, shift 2
            pltpu.VMEM((buf_rows, Cout), jnp.float32),   # conv2 halo, shift 0
            pltpu.VMEM((buf_rows, Cout), jnp.float32),   # conv2 halo, shift 1
            pltpu.VMEM((buf_rows, Cout), jnp.float32),   # conv2 halo, shift 2
        ],
        compiler_params=pltpu.CompilerParams(
            dimension_semantics=("parallel",),
            vmem_limit_bytes=_vmem_limit_bytes(per_step),
        ),
    )(x_blk, w1_k, b1_k, w2_k, b2_k, mask)

    if ch_first_out:
        # Free reshape + cheap slice: drop the R-Wp slack columns; already NCHW.
        return out_ext.reshape(N, Cout, Hp, R)[:, :, :, :Wp]
    # (L, Cout) lane-dense path: strip slack columns, then NHWC -> NCHW.
    y = out_ext.reshape(N, Hp, R, Cout)[:, :, :Wp, :]
    return jnp.transpose(y, (0, 3, 1, 2))


down_pallas = jax.jit(_down_pallas_impl, static_argnames=("mxu_dtype", "out_dtype"))


def _reference(x_nchw, w1, b1, w2, b2):
    """Plain-JAX reference matching torch semantics (NCHW)."""
    N, Cin, H, W = x_nchw.shape
    Hp, Wp = H // 2, W // 2
    xp = jnp.max(x_nchw.reshape(N, Cin, Hp, 2, Wp, 2), axis=(3, 5))   # MaxPool2d(2)
    dn = ("NCHW", "OIHW", "NCHW")

    def conv(x, w, b):
        y = lax.conv_general_dilated(x, w, (1, 1), "SAME", dimension_numbers=dn)
        return jnp.maximum(y + b[None, :, None, None], 0.0)

    return conv(conv(xp, w1, b1), w2, b2)


if __name__ == "__main__":
    N, Cin, Cout, H, W = 2, 4, 8, 16, 16

    key = jax.random.PRNGKey(0)
    kx, k1, k2, k3, k4 = jax.random.split(key, 5)

    x = jax.random.normal(kx, (N, Cin, H, W), dtype=jnp.float32)

    # Deterministic PyTorch-style conv init (uniform(-k, k), k = 1/sqrt(fan_in)).
    bound1 = 1.0 / np.sqrt(Cin * 3 * 3)
    w1 = jax.random.uniform(k1, (Cout, Cin, 3, 3), jnp.float32, -bound1, bound1)
    b1 = jax.random.uniform(k2, (Cout,), jnp.float32, -bound1, bound1)
    bound2 = 1.0 / np.sqrt(Cout * 3 * 3)
    w2 = jax.random.uniform(k3, (Cout, Cout, 3, 3), jnp.float32, -bound2, bound2)
    b2 = jax.random.uniform(k4, (Cout,), jnp.float32, -bound2, bound2)

    ref = jax.block_until_ready(_reference(x, w1, b1, w2, b2))

    # f32 path (default): matches the PyTorch module's forward numerics.
    out = jax.block_until_ready(down_pallas(x, w1, b1, w2, b2))
    assert out.shape == (N, Cout, H // 2, W // 2), out.shape
    np.testing.assert_allclose(np.asarray(out), np.asarray(ref),
                               rtol=1e-5, atol=1e-5)

    # bf16 fast path (v5e/v6e/v7x MXU): bf16 activations/weights in HBM and on the
    # MXU, f32 accumulation; tolerance loosened by construction.
    out_bf16 = jax.block_until_ready(
        down_pallas(x, w1, b1, w2, b2, mxu_dtype=jnp.bfloat16))
    assert out_bf16.shape == (N, Cout, H // 2, W // 2), out_bf16.shape
    np.testing.assert_allclose(np.asarray(out_bf16.astype(jnp.float32)),
                               np.asarray(ref), rtol=5e-2, atol=5e-2)

    print("KERNEL_OK")
</pallas_src>

<mosaic_0001>
module attributes {stable_mosaic.version = 11 : i64} {
  func.func @_down_kernel(%arg0: i32, %arg1: memref<1x8x2x16x8xf32, #tpu.memory_space<vmem>>, %arg2: memref<9x4x8xf32, #tpu.memory_space<vmem>>, %arg3: memref<1x8xf32, #tpu.memory_space<vmem>>, %arg4: memref<9x8x8xf32, #tpu.memory_space<vmem>>, %arg5: memref<1x8xf32, #tpu.memory_space<vmem>>, %arg6: memref<128x1xf32, #tpu.memory_space<vmem>>, %arg7: memref<1x8x128xf32, #tpu.memory_space<vmem>>, %arg8: memref<160x4xf32, #tpu.memory_space<vmem>>, %arg9: memref<160x4xf32, #tpu.memory_space<vmem>>, %arg10: memref<160x4xf32, #tpu.memory_space<vmem>>, %arg11: memref<160x8xf32, #tpu.memory_space<vmem>>, %arg12: memref<160x8xf32, #tpu.memory_space<vmem>>, %arg13: memref<160x8xf32, #tpu.memory_space<vmem>>) attributes {dimension_semantics = [#tpu.dimension_semantics<parallel>], iteration_bounds = array<i64: 2>, scalar_prefetch = 0 : i64, scratch_operands = 6 : i64, tpu.core_type = #tpu.core_type<tc>, window_params = [{transform_indices = @transform_0, window_bounds = array<i64: 1, 8, 2, 16, 8>}, {pipeline_mode = #tpu.pipeline_mode<synchronous>, transform_indices = @transform_1, window_bounds = array<i64: 9, 4, 8>}, {pipeline_mode = #tpu.pipeline_mode<synchronous>, transform_indices = @transform_2, window_bounds = array<i64: 1, 8>}, {pipeline_mode = #tpu.pipeline_mode<synchronous>, transform_indices = @transform_3, window_bounds = array<i64: 9, 8, 8>}, {pipeline_mode = #tpu.pipeline_mode<synchronous>, transform_indices = @transform_4, window_bounds = array<i64: 1, 8>}, {pipeline_mode = #tpu.pipeline_mode<synchronous>, transform_indices = @transform_5, window_bounds = array<i64: 128, 1>}, {transform_indices = @transform_6, window_bounds = array<i64: 1, 8, 128>}]} {
    %cst = arith.constant 0.000000e+00 : f32
    %0 = vector.broadcast %cst : f32 to vector<17x4xf32>
    %c0 = arith.constant 0 : index
    %c0_0 = arith.constant 0 : index
    %1 = vector.load %arg8[%c0, %c0_0] : memref<160x4xf32, #tpu.memory_space<vmem>>, vector<17x4xf32>
    tpu.vector_store %arg8[%c0, %c0_0], %0 {strides = array<i32>} : memref<160x4xf32, #tpu.memory_space<vmem>>, vector<17x4xf32>,
    %cst_1 = arith.constant 0.000000e+00 : f32
    %2 = vector.broadcast %cst_1 : f32 to vector<32x4xf32>
    %c128 = arith.constant 128 : index
    %c0_2 = arith.constant 0 : index
    %3 = vector.load %arg8[%c128, %c0_2] : memref<160x4xf32, #tpu.memory_space<vmem>>, vector<32x4xf32>
    tpu.vector_store %arg8[%c128, %c0_2], %2 {strides = array<i32>} : memref<160x4xf32, #tpu.memory_space<vmem>>, vector<32x4xf32>,
    %cst_3 = arith.constant 0.000000e+00 : f32
    %4 = vector.broadcast %cst_3 : f32 to vector<17x4xf32>
    %c0_4 = arith.constant 0 : index
    %c0_5 = arith.constant 0 : index
    %5 = vector.load %arg9[%c0_4, %c0_5] : memref<160x4xf32, #tpu.memory_space<vmem>>, vector<17x4xf32>
    tpu.vector_store %arg9[%c0_4, %c0_5], %4 {strides = array<i32>} : memref<160x4xf32, #tpu.memory_space<vmem>>, vector<17x4xf32>,
    %cst_6 = arith.constant 0.000000e+00 : f32
    %6 = vector.broadcast %cst_6 : f32 to vector<32x4xf32>
    %c128_7 = arith.constant 128 : index
    %c0_8 = arith.constant 0 : index
    %7 = vector.load %arg9[%c128_7, %c0_8] : memref<160x4xf32, #tpu.memory_space<vmem>>, vector<32x4xf32>
    tpu.vector_store %arg9[%c128_7, %c0_8], %6 {strides = array<i32>} : memref<160x4xf32, #tpu.memory_space<vmem>>, vector<32x4xf32>,
    %cst_9 = arith.constant 0.000000e+00 : f32
    %8 = vector.broadcast %cst_9 : f32 to vector<17x4xf32>
    %c0_10 = arith.constant 0 : index
    %c0_11 = arith.constant 0 : index
    %9 = vector.load %arg10[%c0_10, %c0_11] : memref<160x4xf32, #tpu.memory_space<vmem>>, vector<17x4xf32>
    tpu.vector_store %arg10[%c0_10, %c0_11], %8 {strides = array<i32>} : memref<160x4xf32, #tpu.memory_space<vmem>>, vector<17x4xf32>,
    %cst_12 = arith.constant 0.000000e+00 : f32
    %10 = vector.broadcast %cst_12 : f32 to vector<32x4xf32>
    %c128_13 = arith.constant 128 : index
    %c0_14 = arith.constant 0 : index
    %11 = vector.load %arg10[%c128_13, %c0_14] : memref<160x4xf32, #tpu.memory_space<vmem>>, vector<32x4xf32>
    tpu.vector_store %arg10[%c128_13, %c0_14], %10 {strides = array<i32>} : memref<160x4xf32, #tpu.memory_space<vmem>>, vector<32x4xf32>,
    %cst_15 = arith.constant 0.000000e+00 : f32
    %12 = vector.broadcast %cst_15 : f32 to vector<17x8xf32>
    %c0_16 = arith.constant 0 : index
    %c0_17 = arith.constant 0 : index
    %13 = vector.load %arg11[%c0_16, %c0_17] : memref<160x8xf32, #tpu.memory_space<vmem>>, vector<17x8xf32>
    tpu.vector_store %arg11[%c0_16, %c0_17], %12 {strides = array<i32>} : memref<160x8xf32, #tpu.memory_space<vmem>>, vector<17x8xf32>,
    %cst_18 = arith.constant 0.000000e+00 : f32
    %14 = vector.broadcast %cst_18 : f32 to vector<32x8xf32>
    %c128_19 = arith.constant 128 : index
    %c0_20 = arith.constant 0 : index
    %15 = vector.load %arg11[%c128_19, %c0_20] : memref<160x8xf32, #tpu.memory_space<vmem>>, vector<32x8xf32>
    tpu.vector_store %arg11[%c128_19, %c0_20], %14 {strides = array<i32>} : memref<160x8xf32, #tpu.memory_space<vmem>>, vector<32x8xf32>,
    %cst_21 = arith.constant 0.000000e+00 : f32
    %16 = vector.broadcast %cst_21 : f32 to vector<17x8xf32>
    %c0_22 = arith.constant 0 : index
    %c0_23 = arith.constant 0 : index
    %17 = vector.load %arg12[%c0_22, %c0_23] : memref<160x8xf32, #tpu.memory_space<vmem>>, vector<17x8xf32>
    tpu.vector_store %arg12[%c0_22, %c0_23], %16 {strides = array<i32>} : memref<160x8xf32, #tpu.memory_space<vmem>>, vector<17x8xf32>,
    %cst_24 = arith.constant 0.000000e+00 : f32
    %18 = vector.broadcast %cst_24 : f32 to vector<32x8xf32>
    %c128_25 = arith.constant 128 : index
    %c0_26 = arith.constant 0 : index
    %19 = vector.load %arg12[%c128_25, %c0_26] : memref<160x8xf32, #tpu.memory_space<vmem>>, vector<32x8xf32>
    tpu.vector_store %arg12[%c128_25, %c0_26], %18 {strides = array<i32>} : memref<160x8xf32, #tpu.memory_space<vmem>>, vector<32x8xf32>,
    %cst_27 = arith.constant 0.000000e+00 : f32
    %20 = vector.broadcast %cst_27 : f32 to vector<17x8xf32>
    %c0_28 = arith.constant 0 : index
    %c0_29 = arith.constant 0 : index
    %21 = vector.load %arg13[%c0_28, %c0_29] : memref<160x8xf32, #tpu.memory_space<vmem>>, vector<17x8xf32>
    tpu.vector_store %arg13[%c0_28, %c0_29], %20 {strides = array<i32>} : memref<160x8xf32, #tpu.memory_space<vmem>>, vector<17x8xf32>,
    %cst_30 = arith.constant 0.000000e+00 : f32
    %22 = vector.broadcast %cst_30 : f32 to vector<32x8xf32>
    %c128_31 = arith.constant 128 : index
    %c0_32 = arith.constant 0 : index
    %23 = vector.load %arg13[%c128_31, %c0_32] : memref<160x8xf32, #tpu.memory_space<vmem>>, vector<32x8xf32>
    tpu.vector_store %arg13[%c128_31, %c0_32], %22 {strides = array<i32>} : memref<160x8xf32, #tpu.memory_space<vmem>>, vector<32x8xf32>,
    %c0_33 = arith.constant 0 : index
    %c0_34 = arith.constant 0 : index
    %c0_35 = arith.constant 0 : index
    %c0_36 = arith.constant 0 : index
    %c0_37 = arith.constant 0 : index
    %24 = vector.load %arg1[%c0_33, %c0_34, %c0_35, %c0_36, %c0_37] : memref<1x8x2x16x8xf32, #tpu.memory_space<vmem>>, vector<1x8x2x16x8xf32>
    %25 = vector.shape_cast %24 : vector<1x8x2x16x8xf32> to vector<8x2x16x8xf32>
    %26 = vector.extract_strided_slice %25 {offsets = [0, 0, 0, 0], sizes = [8, 1, 16, 8], strides = [1, 1, 1, 1]} : vector<8x2x16x8xf32> to vector<8x1x16x8xf32>
    %27 = vector.shape_cast %26 : vector<8x1x16x8xf32> to vector<8x16x8xf32>
    %28 = vector.extract_strided_slice %25 {offsets = [0, 1, 0, 0], sizes = [8, 1, 16, 8], strides = [1, 1, 1, 1]} : vector<8x2x16x8xf32> to vector<8x1x16x8xf32>
    %29 = vector.shape_cast %28 : vector<8x1x16x8xf32> to vector<8x16x8xf32>
    %30 = arith.maximumf %27, %29 : vector<8x16x8xf32>
    %31 = vector.extract_strided_slice %30 {offsets = [0, 0, 0], sizes = [8, 16, 4], strides = [1, 1, 1]} : vector<8x16x8xf32> to vector<8x16x4xf32>
    %32 = vector.extract_strided_slice %30 {offsets = [0, 0, 4], sizes = [8, 16, 4], strides = [1, 1, 1]} : vector<8x16x8xf32> to vector<8x16x4xf32>
    %33 = arith.maximumf %31, %32 : vector<8x16x4xf32>
    %34 = vector.shape_cast %33 : vector<8x16x4xf32> to vector<128x4xf32>
    %c17 = arith.constant 17 : index
    %c0_38 = arith.constant 0 : index
    %35 = vector.load %arg8[%c17, %c0_38] : memref<160x4xf32, #tpu.memory_space<vmem>>, vector<128x4xf32>
    tpu.vector_store %arg8[%c17, %c0_38], %34 {strides = array<i32>} : memref<160x4xf32, #tpu.memory_space<vmem>>, vector<128x4xf32>,
    %c16 = arith.constant 16 : index
    %c0_39 = arith.constant 0 : index
    %36 = vector.load %arg9[%c16, %c0_39] : memref<160x4xf32, #tpu.memory_space<vmem>>, vector<128x4xf32>
    tpu.vector_store %arg9[%c16, %c0_39], %34 {strides = array<i32>} : memref<160x4xf32, #tpu.memory_space<vmem>>, vector<128x4xf32>,
    %c15 = arith.constant 15 : index
    %c0_40 = arith.constant 0 : index
    %37 = vector.load %arg10[%c15, %c0_40] : memref<160x4xf32, #tpu.memory_space<vmem>>, vector<128x4xf32>
    tpu.vector_store %arg10[%c15, %c0_40], %34 {strides = array<i32>} : memref<160x4xf32, #tpu.memory_space<vmem>>, vector<128x4xf32>,
    %c0_41 = arith.constant 0 : index
    %c0_42 = arith.constant 0 : index
    %38 = vector.load %arg6[%c0_41, %c0_42] : memref<128x1xf32, #tpu.memory_space<vmem>>, vector<128x1xf32>
    %c0_43 = arith.constant 0 : index
    %c0_44 = arith.constant 0 : index
    %39 = vector.load %arg3[%c0_43, %c0_44] : memref<1x8xf32, #tpu.memory_space<vmem>>, vector<1x8xf32>
    %40 = vector.shape_cast %39 : vector<1x8xf32> to vector<1x8xf32>
    %41 = vector.broadcast %40 : vector<1x8xf32> to vector<128x8xf32>
    %cst_45 = arith.constant 0.000000e+00 : f32
    %42 = vector.broadcast %cst_45 : f32 to vector<128x8xf32>
    %cst_46 = arith.constant 0.000000e+00 : f32
    %43 = vector.broadcast %cst_46 : f32 to vector<128x8xf32>
    %c0_47 = arith.constant 0 : index
    %c0_48 = arith.constant 0 : index
    %44 = vector.load %arg8[%c0_47, %c0_48] : memref<160x4xf32, #tpu.memory_space<vmem>>, vector<128x4xf32>
    %c0_49 = arith.constant 0 : index
    %c0_50 = arith.constant 0 : index
    %c0_51 = arith.constant 0 : index
    %45 = vector.load %arg2[%c0_49, %c0_50, %c0_51] : memref<9x4x8xf32, #tpu.memory_space<vmem>>, vector<1x4x8xf32>
    %46 = vector.shape_cast %45 : vector<1x4x8xf32> to vector<4x8xf32>
    %cst_52 = arith.constant dense<0.000000e+00> : vector<128x8xf32>
    %47 = tpu.matmul %44, %46, %cst_52 {dimension_numbers = #tpu.dot_dimension_numbers<[1], [0], [0], [1], [0, 0, 1, 1], [], []>} : vector<128x4xf32>, vector<4x8xf32>, vector<128x8xf32> -> vector<128x8xf32>
    %48 = arith.addf %41, %47 : vector<128x8xf32>
    %c0_53 = arith.constant 0 : index
    %c0_54 = arith.constant 0 : index
    %49 = vector.load %arg9[%c0_53, %c0_54] : memref<160x4xf32, #tpu.memory_space<vmem>>, vector<128x4xf32>
    %c1 = arith.constant 1 : index
    %c0_55 = arith.constant 0 : index
    %c0_56 = arith.constant 0 : index
    %50 = vector.load %arg2[%c1, %c0_55, %c0_56] : memref<9x4x8xf32, #tpu.memory_space<vmem>>, vector<1x4x8xf32>
    %51 = vector.shape_cast %50 : vector<1x4x8xf32> to vector<4x8xf32>
    %cst_57 = arith.constant dense<0.000000e+00> : vector<128x8xf32>
    %52 = tpu.matmul %49, %51, %cst_57 {dimension_numbers = #tpu.dot_dimension_numbers<[1], [0], [0], [1], [0, 0, 1, 1], [], []>} : vector<128x4xf32>, vector<4x8xf32>, vector<128x8xf32> -> vector<128x8xf32>
    %53 = arith.addf %48, %52 : vector<128x8xf32>
    %c0_58 = arith.constant 0 : index
    %c0_59 = arith.constant 0 : index
    %54 = vector.load %arg10[%c0_58, %c0_59] : memref<160x4xf32, #tpu.memory_space<vmem>>, vector<128x4xf32>
    %c2 = arith.constant 2 : index
    %c0_60 = arith.constant 0 : index
    %c0_61 = arith.constant 0 : index
    %55 = vector.load %arg2[%c2, %c0_60, %c0_61] : memref<9x4x8xf32, #tpu.memory_space<vmem>>, vector<1x4x8xf32>
    %56 = vector.shape_cast %55 : vector<1x4x8xf32> to vector<4x8xf32>
    %cst_62 = arith.constant dense<0.000000e+00> : vector<128x8xf32>
    %57 = tpu.matmul %54, %56, %cst_62 {dimension_numbers = #tpu.dot_dimension_numbers<[1], [0], [0], [1], [0, 0, 1, 1], [], []>} : vector<128x4xf32>, vector<4x8xf32>, vector<128x8xf32> -> vector<128x8xf32>
    %58 = arith.addf %53, %57 : vector<128x8xf32>
    %c16_63 = arith.constant 16 : index
    %c0_64 = arith.constant 0 : index
    %59 = vector.load %arg8[%c16_63, %c0_64] : memref<160x4xf32, #tpu.memory_space<vmem>>, vector<128x4xf32>
    %c3 = arith.constant 3 : index
    %c0_65 = arith.constant 0 : index
    %c0_66 = arith.constant 0 : index
    %60 = vector.load %arg2[%c3, %c0_65, %c0_66] : memref<9x4x8xf32, #tpu.memory_space<vmem>>, vector<1x4x8xf32>
    %61 = vector.shape_cast %60 : vector<1x4x8xf32> to vector<4x8xf32>
    %cst_67 = arith.constant dense<0.000000e+00> : vector<128x8xf32>
    %62 = tpu.matmul %59, %61, %cst_67 {dimension_numbers = #tpu.dot_dimension_numbers<[1], [0], [0], [1], [0, 0, 1, 1], [], []>} : vector<128x4xf32>, vector<4x8xf32>, vector<128x8xf32> -> vector<128x8xf32>
    %63 = arith.addf %42, %62 : vector<128x8xf32>
    %c16_68 = arith.constant 16 : index
    %c0_69 = arith.constant 0 : index
    %64 = vector.load %arg9[%c16_68, %c0_69] : memref<160x4xf32, #tpu.memory_space<vmem>>, vector<128x4xf32>
    %c4 = arith.constant 4 : index
    %c0_70 = arith.constant 0 : index
    %c0_71 = arith.constant 0 : index
    %65 = vector.load %arg2[%c4, %c0_70, %c0_71] : memref<9x4x8xf32, #tpu.memory_space<vmem>>, vector<1x4x8xf32>
    %66 = vector.shape_cast %65 : vector<1x4x8xf32> to vector<4x8xf32>
    %cst_72 = arith.constant dense<0.000000e+00> : vector<128x8xf32>
    %67 = tpu.matmul %64, %66, %cst_72 {dimension_numbers = #tpu.dot_dimension_numbers<[1], [0], [0], [1], [0, 0, 1, 1], [], []>} : vector<128x4xf32>, vector<4x8xf32>, vector<128x8xf32> -> vector<128x8xf32>
    %68 = arith.addf %63, %67 : vector<128x8xf32>
    %c16_73 = arith.constant 16 : index
    %c0_74 = arith.constant 0 : index
    %69 = vector.load %arg10[%c16_73, %c0_74] : memref<160x4xf32, #tpu.memory_space<vmem>>, vector<128x4xf32>
    %c5 = arith.constant 5 : index
    %c0_75 = arith.constant 0 : index
    %c0_76 = arith.constant 0 : index
    %70 = vector.load %arg2[%c5, %c0_75, %c0_76] : memref<9x4x8xf32, #tpu.memory_space<vmem>>, vector<1x4x8xf32>
    %71 = vector.shape_cast %70 : vector<1x4x8xf32> to vector<4x8xf32>
    %cst_77 = arith.constant dense<0.000000e+00> : vector<128x8xf32>
    %72 = tpu.matmul %69, %71, %cst_77 {dimension_numbers = #tpu.dot_dimension_numbers<[1], [0], [0], [1], [0, 0, 1, 1], [], []>} : vector<128x4xf32>, vector<4x8xf32>, vector<128x8xf32> -> vector<128x8xf32>
    %73 = arith.addf %68, %72 : vector<128x8xf32>
    %c32 = arith.constant 32 : index
    %c0_78 = arith.constant 0 : index
    %74 = vector.load %arg8[%c32, %c0_78] : memref<160x4xf32, #tpu.memory_space<vmem>>, vector<128x4xf32>
    %c6 = arith.constant 6 : index
    %c0_79 = arith.constant 0 : index
    %c0_80 = arith.constant 0 : index
    %75 = vector.load %arg2[%c6, %c0_79, %c0_80] : memref<9x4x8xf32, #tpu.memory_space<vmem>>, vector<1x4x8xf32>
    %76 = vector.shape_cast %75 : vector<1x4x8xf32> to vector<4x8xf32>
    %cst_81 = arith.constant dense<0.000000e+00> : vector<128x8xf32>
    %77 = tpu.matmul %74, %76, %cst_81 {dimension_numbers = #tpu.dot_dimension_numbers<[1], [0], [0], [1], [0, 0, 1, 1], [], []>} : vector<128x4xf32>, vector<4x8xf32>, vector<128x8xf32> -> vector<128x8xf32>
    %78 = arith.addf %43, %77 : vector<128x8xf32>
    %c32_82 = arith.constant 32 : index
    %c0_83 = arith.constant 0 : index
    %79 = vector.load %arg9[%c32_82, %c0_83] : memref<160x4xf32, #tpu.memory_space<vmem>>, vector<128x4xf32>
    %c7 = arith.constant 7 : index
    %c0_84 = arith.constant 0 : index
    %c0_85 = arith.constant 0 : index
    %80 = vector.load %arg2[%c7, %c0_84, %c0_85] : memref<9x4x8xf32, #tpu.memory_space<vmem>>, vector<1x4x8xf32>
    %81 = vector.shape_cast %80 : vector<1x4x8xf32> to vector<4x8xf32>
    %cst_86 = arith.constant dense<0.000000e+00> : vector<128x8xf32>
    %82 = tpu.matmul %79, %81, %cst_86 {dimension_numbers = #tpu.dot_dimension_numbers<[1], [0], [0], [1], [0, 0, 1, 1], [], []>} : vector<128x4xf32>, vector<4x8xf32>, vector<128x8xf32> -> vector<128x8xf32>
    %83 = arith.addf %78, %82 : vector<128x8xf32>
    %c32_87 = arith.constant 32 : index
    %c0_88 = arith.constant 0 : index
    %84 = vector.load %arg10[%c32_87, %c0_88] : memref<160x4xf32, #tpu.memory_space<vmem>>, vector<128x4xf32>
    %c8 = arith.constant 8 : index
    %c0_89 = arith.constant 0 : index
    %c0_90 = arith.constant 0 : index
    %85 = vector.load %arg2[%c8, %c0_89, %c0_90] : memref<9x4x8xf32, #tpu.memory_space<vmem>>, vector<1x4x8xf32>
    %86 = vector.shape_cast %85 : vector<1x4x8xf32> to vector<4x8xf32>
    %cst_91 = arith.constant dense<0.000000e+00> : vector<128x8xf32>
    %87 = tpu.matmul %84, %86, %cst_91 {dimension_numbers = #tpu.dot_dimension_numbers<[1], [0], [0], [1], [0, 0, 1, 1], [], []>} : vector<128x4xf32>, vector<4x8xf32>, vector<128x8xf32> -> vector<128x8xf32>
    %88 = arith.addf %83, %87 : vector<128x8xf32>
    %89 = arith.addf %58, %73 : vector<128x8xf32>
    %90 = arith.addf %89, %88 : vector<128x8xf32>
    %cst_92 = arith.constant 0.000000e+00 : f32
    %91 = vector.broadcast %cst_92 : f32 to vector<128x8xf32>
    %92 = arith.maximumf %90, %91 : vector<128x8xf32>
    %93 = vector.broadcast %38 : vector<128x1xf32> to vector<128x8xf32>
    %94 = arith.mulf %92, %93 : vector<128x8xf32>
    %c17_93 = arith.constant 17 : index
    %c0_94 = arith.constant 0 : index
    %95 = vector.load %arg11[%c17_93, %c0_94] : memref<160x8xf32, #tpu.memory_space<vmem>>, vector<128x8xf32>
    tpu.vector_store %arg11[%c17_93, %c0_94], %94 {strides = array<i32>} : memref<160x8xf32, #tpu.memory_space<vmem>>, vector<128x8xf32>,
    %c16_95 = arith.constant 16 : index
    %c0_96 = arith.constant 0 : index
    %96 = vector.load %arg12[%c16_95, %c0_96] : memref<160x8xf32, #tpu.memory_space<vmem>>, vector<128x8xf32>
    tpu.vector_store %arg12[%c16_95, %c0_96], %94 {strides = array<i32>} : memref<160x8xf32, #tpu.memory_space<vmem>>, vector<128x8xf32>,
    %c15_97 = arith.constant 15 : index
    %c0_98 = arith.constant 0 : index
    %97 = vector.load %arg13[%c15_97, %c0_98] : memref<160x8xf32, #tpu.memory_space<vmem>>, vector<128x8xf32>
    tpu.vector_store %arg13[%c15_97, %c0_98], %94 {strides = array<i32>} : memref<160x8xf32, #tpu.memory_space<vmem>>, vector<128x8xf32>,
    %c0_99 = arith.constant 0 : index
    %c0_100 = arith.constant 0 : index
    %98 = vector.load %arg5[%c0_99, %c0_100] : memref<1x8xf32, #tpu.memory_space<vmem>>, vector<1x8xf32>
    %99 = vector.shape_cast %98 : vector<1x8xf32> to vector<1x8xf32>
    %100 = vector.broadcast %99 : vector<1x8xf32> to vector<128x8xf32>
    %cst_101 = arith.constant 0.000000e+00 : f32
    %101 = vector.broadcast %cst_101 : f32 to vector<128x8xf32>
    %cst_102 = arith.constant 0.000000e+00 : f32
    %102 = vector.broadcast %cst_102 : f32 to vector<128x8xf32>
    %c0_103 = arith.constant 0 : index
    %c0_104 = arith.constant 0 : index
    %103 = vector.load %arg11[%c0_103, %c0_104] : memref<160x8xf32, #tpu.memory_space<vmem>>, vector<128x8xf32>
    %c0_105 = arith.constant 0 : index
    %c0_106 = arith.constant 0 : index
    %c0_107 = arith.constant 0 : index
    %104 = vector.load %arg4[%c0_105, %c0_106, %c0_107] : memref<9x8x8xf32, #tpu.memory_space<vmem>>, vector<1x8x8xf32>
    %105 = vector.shape_cast %104 : vector<1x8x8xf32> to vector<8x8xf32>
    %cst_108 = arith.constant dense<0.000000e+00> : vector<128x8xf32>
    %106 = tpu.matmul %103, %105, %cst_108 {dimension_numbers = #tpu.dot_dimension_numbers<[1], [0], [0], [1], [0, 0, 1, 1], [], []>} : vector<128x8xf32>, vector<8x8xf32>, vector<128x8xf32> -> vector<128x8xf32>
    %107 = arith.addf %100, %106 : vector<128x8xf32>
    %c0_109 = arith.constant 0 : index
    %c0_110 = arith.constant 0 : index
    %108 = vector.load %arg12[%c0_109, %c0_110] : memref<160x8xf32, #tpu.memory_space<vmem>>, vector<128x8xf32>
    %c1_111 = arith.constant 1 : index
    %c0_112 = arith.constant 0 : index
    %c0_113 = arith.constant 0 : index
    %109 = vector.load %arg4[%c1_111, %c0_112, %c0_113] : memref<9x8x8xf32, #tpu.memory_space<vmem>>, vector<1x8x8xf32>
    %110 = vector.shape_cast %109 : vector<1x8x8xf32> to vector<8x8xf32>
    %cst_114 = arith.constant dense<0.000000e+00> : vector<128x8xf32>
    %111 = tpu.matmul %108, %110, %cst_114 {dimension_numbers = #tpu.dot_dimension_numbers<[1], [0], [0], [1], [0, 0, 1, 1], [], []>} : vector<128x8xf32>, vector<8x8xf32>, vector<128x8xf32> -> vector<128x8xf32>
    %112 = arith.addf %107, %111 : vector<128x8xf32>
    %c0_115 = arith.constant 0 : index
    %c0_116 = arith.constant 0 : index
    %113 = vector.load %arg13[%c0_115, %c0_116] : memref<160x8xf32, #tpu.memory_space<vmem>>, vector<128x8xf32>
    %c2_117 = arith.constant 2 : index
    %c0_118 = arith.constant 0 : index
    %c0_119 = arith.constant 0 : index
    %114 = vector.load %arg4[%c2_117, %c0_118, %c0_119] : memref<9x8x8xf32, #tpu.memory_space<vmem>>, vector<1x8x8xf32>
    %115 = vector.shape_cast %114 : vector<1x8x8xf32> to vector<8x8xf32>
    %cst_120 = arith.constant dense<0.000000e+00> : vector<128x8xf32>
    %116 = tpu.matmul %113, %115, %cst_120 {dimension_numbers = #tpu.dot_dimension_numbers<[1], [0], [0], [1], [0, 0, 1, 1], [], []>} : vector<128x8xf32>, vector<8x8xf32>, vector<128x8xf32> -> vector<128x8xf32>
    %117 = arith.addf %112, %116 : vector<128x8xf32>
    %c16_121 = arith.constant 16 : index
    %c0_122 = arith.constant 0 : index
    %118 = vector.load %arg11[%c16_121, %c0_122] : memref<160x8xf32, #tpu.memory_space<vmem>>, vector<128x8xf32>
    %c3_123 = arith.constant 3 : index
    %c0_124 = arith.constant 0 : index
    %c0_125 = arith.constant 0 : index
    %119 = vector.load %arg4[%c3_123, %c0_124, %c0_125] : memref<9x8x8xf32, #tpu.memory_space<vmem>>, vector<1x8x8xf32>
    %120 = vector.shape_cast %119 : vector<1x8x8xf32> to vector<8x8xf32>
    %cst_126 = arith.constant dense<0.000000e+00> : vector<128x8xf32>
    %121 = tpu.matmul %118, %120, %cst_126 {dimension_numbers = #tpu.dot_dimension_numbers<[1], [0], [0], [1], [0, 0, 1, 1], [], []>} : vector<128x8xf32>, vector<8x8xf32>, vector<128x8xf32> -> vector<128x8xf32>
    %122 = arith.addf %101, %121 : vector<128x8xf32>
    %c16_127 = arith.constant 16 : index
    %c0_128 = arith.constant 0 : index
    %123 = vector.load %arg12[%c16_127, %c0_128] : memref<160x8xf32, #tpu.memory_space<vmem>>, vector<128x8xf32>
    %c4_129 = arith.constant 4 : index
    %c0_130 = arith.constant 0 : index
    %c0_131 = arith.constant 0 : index
    %124 = vector.load %arg4[%c4_129, %c0_130, %c0_131] : memref<9x8x8xf32, #tpu.memory_space<vmem>>, vector<1x8x8xf32>
    %125 = vector.shape_cast %124 : vector<1x8x8xf32> to vector<8x8xf32>
    %cst_132 = arith.constant dense<0.000000e+00> : vector<128x8xf32>
    %126 = tpu.matmul %123, %125, %cst_132 {dimension_numbers = #tpu.dot_dimension_numbers<[1], [0], [0], [1], [0, 0, 1, 1], [], []>} : vector<128x8xf32>, vector<8x8xf32>, vector<128x8xf32> -> vector<128x8xf32>
    %127 = arith.addf %122, %126 : vector<128x8xf32>
    %c16_133 = arith.constant 16 : index
    %c0_134 = arith.constant 0 : index
    %128 = vector.load %arg13[%c16_133, %c0_134] : memref<160x8xf32, #tpu.memory_space<vmem>>, vector<128x8xf32>
    %c5_135 = arith.constant 5 : index
    %c0_136 = arith.constant 0 : index
    %c0_137 = arith.constant 0 : index
    %129 = vector.load %arg4[%c5_135, %c0_136, %c0_137] : memref<9x8x8xf32, #tpu.memory_space<vmem>>, vector<1x8x8xf32>
    %130 = vector.shape_cast %129 : vector<1x8x8xf32> to vector<8x8xf32>
    %cst_138 = arith.constant dense<0.000000e+00> : vector<128x8xf32>
    %131 = tpu.matmul %128, %130, %cst_138 {dimension_numbers = #tpu.dot_dimension_numbers<[1], [0], [0], [1], [0, 0, 1, 1], [], []>} : vector<128x8xf32>, vector<8x8xf32>, vector<128x8xf32> -> vector<128x8xf32>
    %132 = arith.addf %127, %131 : vector<128x8xf32>
    %c32_139 = arith.constant 32 : index
    %c0_140 = arith.constant 0 : index
    %133 = vector.load %arg11[%c32_139, %c0_140] : memref<160x8xf32, #tpu.memory_space<vmem>>, vector<128x8xf32>
    %c6_141 = arith.constant 6 : index
    %c0_142 = arith.constant 0 : index
    %c0_143 = arith.constant 0 : index
    %134 = vector.load %arg4[%c6_141, %c0_142, %c0_143] : memref<9x8x8xf32, #tpu.memory_space<vmem>>, vector<1x8x8xf32>
    %135 = vector.shape_cast %134 : vector<1x8x8xf32> to vector<8x8xf32>
    %cst_144 = arith.constant dense<0.000000e+00> : vector<128x8xf32>
    %136 = tpu.matmul %133, %135, %cst_144 {dimension_numbers = #tpu.dot_dimension_numbers<[1], [0], [0], [1], [0, 0, 1, 1], [], []>} : vector<128x8xf32>, vector<8x8xf32>, vector<128x8xf32> -> vector<128x8xf32>
    %137 = arith.addf %102, %136 : vector<128x8xf32>
    %c32_145 = arith.constant 32 : index
    %c0_146 = arith.constant 0 : index
    %138 = vector.load %arg12[%c32_145, %c0_146] : memref<160x8xf32, #tpu.memory_space<vmem>>, vector<128x8xf32>
    %c7_147 = arith.constant 7 : index
    %c0_148 = arith.constant 0 : index
    %c0_149 = arith.constant 0 : index
    %139 = vector.load %arg4[%c7_147, %c0_148, %c0_149] : memref<9x8x8xf32, #tpu.memory_space<vmem>>, vector<1x8x8xf32>
    %140 = vector.shape_cast %139 : vector<1x8x8xf32> to vector<8x8xf32>
    %cst_150 = arith.constant dense<0.000000e+00> : vector<128x8xf32>
    %141 = tpu.matmul %138, %140, %cst_150 {dimension_numbers = #tpu.dot_dimension_numbers<[1], [0], [0], [1], [0, 0, 1, 1], [], []>} : vector<128x8xf32>, vector<8x8xf32>, vector<128x8xf32> -> vector<128x8xf32>
    %142 = arith.addf %137, %141 : vector<128x8xf32>
    %c32_151 = arith.constant 32 : index
    %c0_152 = arith.constant 0 : index
    %143 = vector.load %arg13[%c32_151, %c0_152] : memref<160x8xf32, #tpu.memory_space<vmem>>, vector<128x8xf32>
    %c8_153 = arith.constant 8 : index
    %c0_154 = arith.constant 0 : index
    %c0_155 = arith.constant 0 : index
    %144 = vector.load %arg4[%c8_153, %c0_154, %c0_155] : memref<9x8x8xf32, #tpu.memory_space<vmem>>, vector<1x8x8xf32>
    %145 = vector.shape_cast %144 : vector<1x8x8xf32> to vector<8x8xf32>
    %cst_156 = arith.constant dense<0.000000e+00> : vector<128x8xf32>
    %146 = tpu.matmul %143, %145, %cst_156 {dimension_numbers = #tpu.dot_dimension_numbers<[1], [0], [0], [1], [0, 0, 1, 1], [], []>} : vector<128x8xf32>, vector<8x8xf32>, vector<128x8xf32> -> vector<128x8xf32>
    %147 = arith.addf %142, %146 : vector<128x8xf32>
    %148 = arith.addf %117, %132 : vector<128x8xf32>
    %149 = arith.addf %148, %147 : vector<128x8xf32>
    %cst_157 = arith.constant 0.000000e+00 : f32
    %150 = vector.broadcast %cst_157 : f32 to vector<128x8xf32>
    %151 = arith.maximumf %149, %150 : vector<128x8xf32>
    %152 = tpu.transpose %151, [1, 0] : vector<128x8xf32> -> vector<8x128xf32>
    %c0_158 = arith.constant 0 : index
    %c0_159 = arith.constant 0 : index
    %c0_160 = arith.constant 0 : index
    %153 = vector.load %arg7[%c0_158, %c0_159, %c0_160] : memref<1x8x128xf32, #tpu.memory_space<vmem>>, vector<1x8x128xf32>
    %154 = vector.shape_cast %153 : vector<1x8x128xf32> to vector<8x128xf32>
    %155 = vector.shape_cast %152 : vector<8x128xf32> to vector<1x8x128xf32>
    tpu.vector_store %arg7[%c0_158, %c0_159, %c0_160], %155 {strides = array<i32>} : memref<1x8x128xf32, #tpu.memory_space<vmem>>, vector<1x8x128xf32>,
    return
  }
  func.func @transform_0(%arg0: i32) -> (i32, i32, i32, i32, i32) {
    %c0_i32 = arith.constant 0 : i32
    %c0_i32_0 = arith.constant 0 : i32
    %c0_i32_1 = arith.constant 0 : i32
    %c0_i32_2 = arith.constant 0 : i32
    %c0_i32_3 = arith.constant 0 : i32
    return %arg0, %c0_i32, %c0_i32_0, %c0_i32_1, %c0_i32_2 : i32, i32, i32, i32, i32
  }
  func.func @transform_1(%arg0: i32) -> (i32, i32, i32) {
    %c0_i32 = arith.constant 0 : i32
    %c0_i32_0 = arith.constant 0 : i32
    %c0_i32_1 = arith.constant 0 : i32
    %c0_i32_2 = arith.constant 0 : i32
    return %c0_i32, %c0_i32_0, %c0_i32_1 : i32, i32, i32
  }
  func.func @transform_2(%arg0: i32) -> (i32, i32) {
    %c0_i32 = arith.constant 0 : i32
    %c0_i32_0 = arith.constant 0 : i32
    %c0_i32_1 = arith.constant 0 : i32
    return %c0_i32, %c0_i32_0 : i32, i32
  }
  func.func @transform_3(%arg0: i32) -> (i32, i32, i32) {
    %c0_i32 = arith.constant 0 : i32
    %c0_i32_0 = arith.constant 0 : i32
    %c0_i32_1 = arith.constant 0 : i32
    %c0_i32_2 = arith.constant 0 : i32
    return %c0_i32, %c0_i32_0, %c0_i32_1 : i32, i32, i32
  }
  func.func @transform_4(%arg0: i32) -> (i32, i32) {
    %c0_i32 = arith.constant 0 : i32
    %c0_i32_0 = arith.constant 0 : i32
    %c0_i32_1 = arith.constant 0 : i32
    return %c0_i32, %c0_i32_0 : i32, i32
  }
  func.func @transform_5(%arg0: i32) -> (i32, i32) {
    %c0_i32 = arith.constant 0 : i32
    %c0_i32_0 = arith.constant 0 : i32
    %c0_i32_1 = arith.constant 0 : i32
    return %c0_i32, %c0_i32_0 : i32, i32
  }
  func.func @transform_6(%arg0: i32) -> (i32, i32, i32) {
    %c0_i32 = arith.constant 0 : i32
    %c0_i32_0 = arith.constant 0 : i32
    %c0_i32_1 = arith.constant 0 : i32
    return %arg0, %c0_i32, %c0_i32_0 : i32, i32, i32
  }
}

</mosaic_0001>

<bundles_post_ra>
// kernel: _down_pallas_impl.1
= control target key start
LH: loop header
LB: loop body
LE: loop exit
PB: predicated region body
PF: predicated region fallthrough
CT: control target
= control target key end

     0   :  { %s6259_s21 = smov 0   ;;  %s7446_s0 = inlined_call_operand.vmem [shape: f32[2,8,2,16,8], index: 0, kind: input, shape index: {}]   ;;  %s7447_s1 = inlined_call_operand.vmem [shape: f32[9,4,8], index: 1, kind: input, shape index: {}]   ;;  %s7448_s2 = inlined_call_operand.vmem [shape: f32[1,8], index: 2, kind: input, shape index: {}]   ;;  %s7449_s3 = inlined_call_operand.vmem [shape: f32[9,8,8], index: 3, kind: input, shape index: {}]   ;;  %s7450_s4 = inlined_call_operand.vmem [shape: f32[1,8], index: 4, kind: input, shape index: {}]   ;;  %s7451_s5 = inlined_call_operand.vmem [shape: f32[128,1], index: 5, kind: input, shape index: {}]   ;;  %s7452_s6 = inlined_call_operand.vmem [shape: f32[2,8,128], index: 6, kind: output, shape index: {}]  }
   0x1 LB: > { %s4812_s22 = sadd.s32 4294967295, %s6219_s21   ;;  %p4816_p0 = scmp.ge.s32.totalorder %s6219_s21, 1  ;;  %s6219_s21 = sphi %s6259_s21, %s16_s21  }
   0x2   : > { %p212_p1 = scmp.lt.s32.totalorder %s6219_s21, 3 }
   0x4   : > { %p213_p2 = pnand %p4816_p0, %p212_p1 }
   0x5   : > { %p6269_p3 = scmp.lt.s32.totalorder (!%p213_p2), %s4812_s22, 1  ;;  %vm250_vm0 = vcmask (!%p213_p2), 31744   ;;  %vm253_vm1 = vcmask (!%p213_p2), 24576   ;;  %v6221_v0 = vmov (!%p213_p2), 0.0   ;;  %v511_v1 = vld [vmem:[%s7447_s1] sm:$0xf] (!%p213_p2) }
   0x6   : > { %216 = sbr.rel (%p213_p2) target bundleno = 1228 (0x4cc), region = 44  ;;  %254 = vst.msk [vmem:[#allocation2 + $0x10] sm:$0x1] (!%p213_p2), %vm253_vm1, %v6221_v0  ;;  %261 = vst.msk [vmem:[#allocation3 + $0x10] sm:$0x1] (!%p213_p2), %vm253_vm1, %v6221_v0  ;;  %vm560_vm2 = vcmask (!%p213_p2), 1043456  }
   0x7   : > { %267 = vst.msk [vmem:[#allocation4 + $0x8] sm:$0xff] (!%p213_p2), %vm250_vm0, %v6221_v0  ;;  %251 = vst.msk [vmem:[#allocation2] sm:$0xff] (!%p213_p2), %vm250_vm0, %v6221_v0  ;;  %5444 = vmatprep.subr.msk.mxu0 (!%p213_p2), %vm560_vm2, %v511_v1  ;;  %s6222_s30 = smov (!%p213_p2), 124   ;;  %v4838_v27 = vld [vmem:[%s7447_s1 + $0x4] sm:$0xf] (!%p213_p2)  ;;  %vm273_vm3 = vcmask (!%p213_p2), 64512  }
   0x8   : > { %268 = vst.msk [vmem:[#allocation4 + $0x10] sm:$0x1] (!%p213_p2), %vm253_vm1, %v6221_v0  ;;  %5445 = vmatpush3.msk.msra.mxu0 (!%p213_p2), %vm560_vm2, %v511_v1  ;;  %v6431_v53 = vld [vmem:[%s7447_s1 + $0x8] sm:$0xf] (!%p213_p2)  ;;  %vm276_vm4 = vcmask (!%p213_p2), 57344  }
   0x9   : > { %252 = vst.msk [vmem:[#allocation2 + $0x8] sm:$0xff] (!%p213_p2), %vm250_vm0, %v6221_v0  ;;  %255 = vst.msk [vmem:[#allocation2 + $0x80] sm:$0xff] (!%p213_p2), %vm250_vm0, %v6221_v0  ;;  %5470 = vmatprep.subr.msk.mxu0 (!%p213_p2), %vm560_vm2, %v4838_v27 }
   0xa   : > { %256 = vst.msk [vmem:[#allocation2 + $0x88] sm:$0xff] (!%p213_p2), %vm250_vm0, %v6221_v0  ;;  %257 = vst.msk [vmem:[#allocation2 + $0x90] sm:$0xff] (!%p213_p2), %vm250_vm0, %v6221_v0 }
   0xb   : > { %258 = vst.msk [vmem:[#allocation2 + $0x98] sm:$0xff] (!%p213_p2), %vm250_vm0, %v6221_v0  ;;  %259 = vst.msk [vmem:[#allocation3] sm:$0xff] (!%p213_p2), %vm250_vm0, %v6221_v0 }
   0xc   : > { %260 = vst.msk [vmem:[#allocation3 + $0x8] sm:$0xff] (!%p213_p2), %vm250_vm0, %v6221_v0  ;;  %262 = vst.msk [vmem:[#allocation3 + $0x80] sm:$0xff] (!%p213_p2), %vm250_vm0, %v6221_v0 }
   0xd   : > { %263 = vst.msk [vmem:[#allocation3 + $0x88] sm:$0xff] %vm250_vm0, %v6221_v0  ;;  %264 = vst.msk [vmem:[#allocation3 + $0x90] sm:$0xff] %vm250_vm0, %v6221_v0  ;;  %s7455_s22 = smov (!%p6269_p3, %s4812_s22), 1 }
   0xe   : > { %265 = vst.msk [vmem:[#allocation3 + $0x98] sm:$0xff] %vm250_vm0, %v6221_v0  ;;  %266 = vst.msk [vmem:[#allocation4] sm:$0xff] %vm250_vm0, %v6221_v0  ;;  %s5137_s26 = sshll.u32 %s7455_s22, 8  ;;  %v495_v24 = vld [vmem:[#allocation2] sm:$0xff]  ;;  %s4819_s11 = sshll.u32 %s7455_s22, 3 }
   0xf   : > { %269 = vst.msk [vmem:[#allocation4 + $0x80] sm:$0xff] %vm250_vm0, %v6221_v0  ;;  %270 = vst.msk [vmem:[#allocation4 + $0x88] sm:$0xff] %vm250_vm0, %v6221_v0  ;;  %s6326_s29 = scalar_lea.vmem %s7446_s0, %s5137_s26  ;;  %5446 = vmatprep.mubr.msk.f32.mxu0 %vm250_vm0, %v495_v24  ;;  %s249_s14 = scalar_lea.vmem %s7452_s6, %s4819_s11 }
  0x10   : > { %271 = vst.msk [vmem:[#allocation4 + $0x90] sm:$0xff] %vm250_vm0, %v6221_v0  ;;  %272 = vst.msk [vmem:[#allocation4 + $0x98] sm:$0xff] %vm250_vm0, %v6221_v0  ;;  %v300_v2 = vld [vmem:[%s6326_s29 + $0x20] sm:$0xff]  ;;  %v302_v3 = vld [vmem:[%s6326_s29 + $0x30] sm:$0xff] }
  0x11   : > { %v296_v4 = vld [vmem:[%s6326_s29] sm:$0xff]  ;;  %v6332_v5 = vmax.f32 %v300_v2, %v302_v3  ;;  %v298_v6 = vld [vmem:[%s6326_s29 + $0x10] sm:$0xff]  ;;  %v301_v7 = vld [vmem:[%s6326_s29 + $0x28] sm:$0xff]  ;;  %274 = vst.msk [vmem:[#allocation5] sm:$0xff] %vm273_vm3, %v6221_v0 }
  0x12   : > { %v303_v8 = vld [vmem:[%s6326_s29 + $0x38] sm:$0xff]  ;;  %v6337_v9 = vmax.f32 %v296_v4, %v298_v6  ;;  %v297_v10 = vld [vmem:[%s6326_s29 + $0x8] sm:$0xff]  ;;  %v304_v16 = vld [vmem:[%s6326_s29 + $0x40] sm:$0xff]  ;;  %275 = vst.msk [vmem:[#allocation5 + $0x8] sm:$0xff] %vm273_vm3, %v6221_v0 }
  0x13   : > { %v299_v11 = vld [vmem:[%s6326_s29 + $0x18] sm:$0xff]  ;;  %364 = vrot.lane.b32.xlu1 %v6332_v5, %s6222_s30  ;;  %v6343_v12 = vmax.f32 %v301_v7, %v303_v8  ;;  %v305_v14 = vld [vmem:[%s6326_s29 + $0x48] sm:$0xff]  ;;  %v306_v17 = vld [vmem:[%s6326_s29 + $0x50] sm:$0xff]  ;;  %278 = vst.msk [vmem:[#allocation5 + $0x80] sm:$0xff] %vm273_vm3, %v6221_v0 }
  0x14   : > { %360 = vrot.lane.b32.xlu0 %v6337_v9, %s6222_s30  ;;  %v6347_v13 = vmax.f32 %v297_v10, %v299_v11  ;;  %v307_v15 = vld [vmem:[%s6326_s29 + $0x58] sm:$0xff]  ;;  %v6359_v19 = vmax.f32 %v304_v16, %v306_v17  ;;  %v309_v20 = vld [vmem:[%s6326_s29 + $0x68] sm:$0xff]  ;;  %v308_v22 = vld [vmem:[%s6326_s29 + $0x60] sm:$0xff]  ;;  %279 = vst.msk [vmem:[#allocation5 + $0x88] sm:$0xff] %vm273_vm3, %v6221_v0 }
  0x15   : > { %v6355_v18 = vmax.f32 %v305_v14, %v307_v15  ;;  %v311_v21 = vld [vmem:[%s6326_s29 + $0x78] sm:$0xff]  ;;  %v310_v23 = vld [vmem:[%s6326_s29 + $0x70] sm:$0xff]  ;;  %v496_v26 = vld [vmem:[#allocation2 + $0x8] sm:$0xff]  ;;  %280 = vst.msk [vmem:[#allocation5 + $0x90] sm:$0xff] %vm273_vm3, %v6221_v0 }
  0x16   : > { %v6367_v25 = vmax.f32 %v309_v20, %v311_v21  ;;  %v6375_v28 = vmax.f32 %v308_v22, %v310_v23  ;;  %v313_v29 = vld [vmem:[%s6326_s29 + $0x88] sm:$0xff]  ;;  %v315_v30 = vld [vmem:[%s6326_s29 + $0x98] sm:$0xff]  ;;  %5447 = vmatmul.mubr.msk.f32.vlgmr.msra.gmra.mrb[0].mxu0 %vm250_vm0, %v496_v26  ;;  %v312_v31 = vld [vmem:[%s6326_s29 + $0x80] sm:$0xff]  ;;  %281 = vst.msk [vmem:[#allocation5 + $0x98] sm:$0xff] %vm273_vm3, %v6221_v0 }
  0x17   : > { %366 = vrot.lane.b32.xlu1 %v6343_v12, %s6222_s30  ;;  %v314_v32 = vld [vmem:[%s6326_s29 + $0x90] sm:$0xff]  ;;  %5471 = vmatpush3.msk.msra.mxu0 %vm560_vm2, %v4838_v27  ;;  %v6386_v33 = vmax.f32 %v313_v29, %v315_v30  ;;  %v317_v35 = vld [vmem:[%s6326_s29 + $0xa8] sm:$0xff]  ;;  %v319_v36 = vld [vmem:[%s6326_s29 + $0xb8] sm:$0xff]  ;;  %282 = vst.msk [vmem:[#allocation6] sm:$0xff] %vm273_vm3, %v6221_v0 }
  0x18   : > { %362 = vrot.lane.b32.xlu0 %v6347_v13, %s6222_s30  ;;  %v6390_v34 = vmax.f32 %v312_v31, %v314_v32  ;;  %v316_v37 = vld [vmem:[%s6326_s29 + $0xa0] sm:$0xff]  ;;  %v318_v38 = vld [vmem:[%s6326_s29 + $0xb0] sm:$0xff]  ;;  %v6398_v39 = vmax.f32 %v317_v35, %v319_v36  ;;  %v321_v41 = vld [vmem:[%s6326_s29 + $0xc8] sm:$0xff]  ;;  %5496 = vmatprep.subr.msk.mxu0 %vm560_vm2, %v6431_v53  ;;  %283 = vst.msk [vmem:[#allocation6 + $0x8] sm:$0xff] %vm273_vm3, %v6221_v0 }
  0x19   : > { %v6402_v40 = vmax.f32 %v316_v37, %v318_v38  ;;  %v323_v42 = vld [vmem:[%s6326_s29 + $0xd8] sm:$0xff]  ;;  %v320_v43 = vld [vmem:[%s6326_s29 + $0xc0] sm:$0xff]  ;;  %v322_v44 = vld [vmem:[%s6326_s29 + $0xd0] sm:$0xff]  ;;  %285 = vst.msk [vmem:[#allocation6 + $0x80] sm:$0xff] %vm273_vm3, %v6221_v0 }
  0x1a   : > { %v6410_v45 = vmax.f32 %v321_v41, %v323_v42  ;;  %v6414_v46 = vmax.f32 %v320_v43, %v322_v44  ;;  %v325_v47 = vld [vmem:[%s6326_s29 + $0xe8] sm:$0xff]  ;;  %v327_v48 = vld [vmem:[%s6326_s29 + $0xf8] sm:$0xff]  ;;  %v324_v49 = vld [vmem:[%s6326_s29 + $0xe0] sm:$0xff]  ;;  %286 = vst.msk [vmem:[#allocation6 + $0x88] sm:$0xff] %vm273_vm3, %v6221_v0 }
  0x1b   : > { %370 = vrot.lane.b32.xlu1 %v6355_v18, %s6222_s30  ;;  %v326_v50 = vld [vmem:[%s6326_s29 + $0xf0] sm:$0xff]  ;;  %v6422_v51 = vmax.f32 %v325_v47, %v327_v48  ;;  %v725_v37 = vld [vmem:[#allocation3] sm:$0xff]  ;;  %v726_v38 = vld [vmem:[#allocation3 + $0x8] sm:$0xff]  ;;  %287 = vst.msk [vmem:[#allocation6 + $0x90] sm:$0xff] %vm273_vm3, %v6221_v0 }
  0x1c   : > { %368 = vrot.lane.b32.xlu0 %v6359_v19, %s6222_s30  ;;  %v6426_v52 = vmax.f32 %v324_v49, %v326_v50  ;;  %288 = vst.msk [vmem:[#allocation6 + $0x98] sm:$0xff] %vm273_vm3, %v6221_v0  ;;  %289 = vst.msk [vmem:[#allocation7] sm:$0xff] %vm273_vm3, %v6221_v0 }
  0x1d   : > { %290 = vst.msk [vmem:[#allocation7 + $0x8] sm:$0xff] %vm273_vm3, %v6221_v0  ;;  %292 = vst.msk [vmem:[#allocation7 + $0x80] sm:$0xff] %vm273_vm3, %v6221_v0 }
  0x1e   : > { %293 = vst.msk [vmem:[#allocation7 + $0x88] sm:$0xff] %vm273_vm3, %v6221_v0  ;;  %294 = vst.msk [vmem:[#allocation7 + $0x90] sm:$0xff] %vm273_vm3, %v6221_v0 }
  0x1f   : > { %374 = vrot.lane.b32.xlu1 %v6367_v25, %s6222_s30  ;;  %295 = vst.msk [vmem:[#allocation7 + $0x98] sm:$0xff] %vm273_vm3, %v6221_v0 }
  0x20   : > { %372 = vrot.lane.b32.xlu0 %v6375_v28, %s6222_s30  ;;  %277 = vst.msk [vmem:[#allocation5 + $0x10] sm:$0x1] %vm276_vm4, %v6221_v0  ;;  %284 = vst.msk [vmem:[#allocation6 + $0x10] sm:$0x1] %vm276_vm4, %v6221_v0 }
  0x21   : > { %291 = vst.msk [vmem:[#allocation7 + $0x10] sm:$0x1] %vm276_vm4, %v6221_v0  ;;  %v6999_v0 = vld [vmem:[%s7449_s3 + $0x10] sm:$0xff] }
  0x23   : > { %378 = vrot.lane.b32.xlu1 %v6386_v33, %s6222_s30 }
  0x24   : > { %376 = vrot.lane.b32.xlu0 %v6390_v34, %s6222_s30 }
  0x27   : > { %382 = vrot.lane.b32.xlu1 %v6398_v39, %s6222_s30 }
  0x28   : > { %380 = vrot.lane.b32.xlu0 %v6402_v40, %s6222_s30 }
  0x2b   : > { %386 = vrot.lane.b32.xlu1 %v6410_v45, %s6222_s30 }
  0x2c   : > { %384 = vrot.lane.b32.xlu0 %v6414_v46, %s6222_s30 }
  0x2f   : > { %390 = vrot.lane.b32.xlu1 %v6422_v51, %s6222_s30 }
  0x30   : > { %388 = vrot.lane.b32.xlu0 %v6426_v52, %s6222_s30 }
  0x85   : > { %v365_v54 = vpop.permute.xlu1 %364 }
  0x86   : > { %v410_v55 = vmax.f32 %v6332_v5, %v365_v54  ;;  %v361_v56 = vpop.permute.xlu0 %360 }
  0x87   : > { %v408_v57 = vmax.f32 %v6337_v9, %v361_v56  ;;  %v4874_v56 = vld [vmem:[%s7447_s1 + $0xc] sm:$0xf] }
  0x88   : > { %426 = vst.msk [vmem:[#allocation2 + $0x21] sm:$0xff] %vm250_vm0, %v410_v55  ;;  %442 = vst.msk [vmem:[#allocation3 + $0x20] sm:$0xff] %vm250_vm0, %v410_v55 }
  0x89   : > { %458 = vst.msk [vmem:[#allocation4 + $0x1f] sm:$0xff] %vm250_vm0, %v410_v55  ;;  %424 = vst.msk [vmem:[#allocation2 + $0x11] sm:$0xff] %vm250_vm0, %v408_v57  ;;  %v367_v58 = vpop.permute.xlu1 %366 }
  0x8a   : > { %440 = vst.msk [vmem:[#allocation3 + $0x10] sm:$0xff] %vm250_vm0, %v408_v57  ;;  %456 = vst.msk [vmem:[#allocation4 + $0xf] sm:$0xff] %vm250_vm0, %v408_v57  ;;  %v411_v59 = vmax.f32 %v6343_v12, %v367_v58  ;;  %v363_v60 = vpop.permute.xlu0 %362 }
  0x8b   : > { %v409_v61 = vmax.f32 %v6347_v13, %v363_v60 }
  0x8c   : > { %427 = vst.msk [vmem:[#allocation2 + $0x29] sm:$0xff] %vm250_vm0, %v411_v59  ;;  %443 = vst.msk [vmem:[#allocation3 + $0x28] sm:$0xff] %vm250_vm0, %v411_v59 }
  0x8d   : > { %459 = vst.msk [vmem:[#allocation4 + $0x27] sm:$0xff] %vm250_vm0, %v411_v59  ;;  %425 = vst.msk [vmem:[#allocation2 + $0x19] sm:$0xff] %vm250_vm0, %v409_v61  ;;  %v371_v62 = vpop.permute.xlu1 %370 }
  0x8e   : > { %441 = vst.msk [vmem:[#allocation3 + $0x18] sm:$0xff] %vm250_vm0, %v409_v61  ;;  %457 = vst.msk [vmem:[#allocation4 + $0x17] sm:$0xff] %vm250_vm0, %v409_v61  ;;  %v369_v63 = vpop.permute.xlu0 %368  ;;  %v413_v1 = vmax.f32 %v6355_v18, %v371_v62 }
  0x8f   : > { %v412_v2 = vmax.f32 %v6359_v19, %v369_v63  ;;  %v6575_v42 = vld [vmem:[#allocation3 + $0x20] sm:$0xff] }
  0x90   : > { %429 = vst.msk [vmem:[#allocation2 + $0x39] sm:$0xff] %vm250_vm0, %v413_v1  ;;  %445 = vst.msk [vmem:[#allocation3 + $0x38] sm:$0xff] %vm250_vm0, %v413_v1  ;;  %v6460_v3 = vld [vmem:[#allocation2 + $0x10] sm:$0xff] }
  0x91   : > { %461 = vst.msk [vmem:[#allocation4 + $0x37] sm:$0xff] %vm250_vm0, %v413_v1  ;;  %428 = vst.msk [vmem:[#allocation2 + $0x31] sm:$0xff] %vm250_vm0, %v412_v2  ;;  %5449 = vmatprep.mubr.msk.f32.mxu0 %vm250_vm0, %v6460_v3  ;;  %v375_v4 = vpop.permute.xlu1 %374  ;;  %v956_v55 = vld [vmem:[#allocation4 + $0x8] sm:$0xff] }
  0x92   : > { %444 = vst.msk [vmem:[#allocation3 + $0x30] sm:$0xff] %vm250_vm0, %v412_v2  ;;  %460 = vst.msk [vmem:[#allocation4 + $0x2f] sm:$0xff] %vm250_vm0, %v412_v2  ;;  %v373_v5 = vpop.permute.xlu0 %372  ;;  %v415_v6 = vmax.f32 %v6367_v25, %v375_v4 }
  0x93   : > { %v414_v7 = vmax.f32 %v6375_v28, %v373_v5  ;;  %v6488_v14 = vld [vmem:[#allocation2 + $0x28] sm:$0xff] }
  0x94   : > { %431 = vst.msk [vmem:[#allocation2 + $0x49] sm:$0xff] %vm250_vm0, %v415_v6  ;;  %447 = vst.msk [vmem:[#allocation3 + $0x48] sm:$0xff] %vm250_vm0, %v415_v6  ;;  %v6472_v8 = vld [vmem:[#allocation2 + $0x18] sm:$0xff]  ;;  %v6474_v9 = vld [vmem:[#allocation2 + $0x20] sm:$0xff] }
  0x95   : > { %463 = vst.msk [vmem:[#allocation4 + $0x47] sm:$0xff] %vm250_vm0, %v415_v6  ;;  %430 = vst.msk [vmem:[#allocation2 + $0x41] sm:$0xff] %vm250_vm0, %v414_v7  ;;  %5450 = vmatmul.mubr.msk.f32.gmra.mrb[2].mxu0 %vm250_vm0, %v6472_v8  ;;  %v379_v10 = vpop.permute.xlu1 %378  ;;  %v6571_v41 = vld [vmem:[#allocation3 + $0x18] sm:$0xff]  ;;  %v6579_v43 = vld [vmem:[#allocation3 + $0x28] sm:$0xff] }
  0x96   : > { %446 = vst.msk [vmem:[#allocation3 + $0x40] sm:$0xff] %vm250_vm0, %v414_v7  ;;  %462 = vst.msk [vmem:[#allocation4 + $0x3f] sm:$0xff] %vm250_vm0, %v414_v7  ;;  %5452 = vmatprep.mubr.msk.f32.mxu0 %vm250_vm0, %v6474_v9  ;;  %v377_v11 = vpop.permute.xlu0 %376  ;;  %v417_v12 = vmax.f32 %v6386_v33, %v379_v10  ;;  %v6628_v57 = vld [vmem:[#allocation4 + $0x10] sm:$0xff]  ;;  %v6634_v58 = vld [vmem:[#allocation4 + $0x18] sm:$0xff] }
  0x97   : > { %v416_v13 = vmax.f32 %v6390_v34, %v377_v11  ;;  %v6638_v59 = vld [vmem:[#allocation4 + $0x20] sm:$0xff]  ;;  %v4910_v11 = vld [vmem:[%s7447_s1 + $0x14] sm:$0xf] }
  0x98   : > { %433 = vst.msk [vmem:[#allocation2 + $0x59] sm:$0xff] %vm250_vm0, %v417_v12  ;;  %449 = vst.msk [vmem:[#allocation3 + $0x58] sm:$0xff] %vm250_vm0, %v417_v12  ;;  %v6490_v15 = vld [vmem:[#allocation2 + $0x30] sm:$0xff]  ;;  %v6500_v19 = vld [vmem:[#allocation2 + $0x38] sm:$0xff] }
  0x99   : > { %465 = vst.msk [vmem:[#allocation4 + $0x57] sm:$0xff] %vm250_vm0, %v417_v12  ;;  %432 = vst.msk [vmem:[#allocation2 + $0x51] sm:$0xff] %vm250_vm0, %v416_v13  ;;  %5453 = vmatmul.mubr.msk.f32.gmra.mrb[4].mxu0 %vm250_vm0, %v6488_v14  ;;  %v383_v16 = vpop.permute.xlu1 %382  ;;  %v6583_v44 = vld [vmem:[#allocation3 + $0x30] sm:$0xff]  ;;  %v6642_v60 = vld [vmem:[#allocation4 + $0x28] sm:$0xff] }
  0x9a   : > { %448 = vst.msk [vmem:[#allocation3 + $0x50] sm:$0xff] %vm250_vm0, %v416_v13  ;;  %464 = vst.msk [vmem:[#allocation4 + $0x4f] sm:$0xff] %vm250_vm0, %v416_v13  ;;  %5455 = vmatprep.mubr.msk.f32.mxu0 %vm250_vm0, %v6490_v15  ;;  %v381_v17 = vpop.permute.xlu0 %380  ;;  %v419_v18 = vmax.f32 %v6398_v39, %v383_v16  ;;  %v4875_v39 = vld [vmem:[%s7447_s1 + $0x10] sm:$0xf]  ;;  %v4929_v16 = vld [vmem:[%s7447_s1 + $0x1c] sm:$0xf] }
  0x9b   : > { %v418_v20 = vmax.f32 %v6402_v40, %v381_v17  ;;  %v6564_v40 = vld [vmem:[#allocation3 + $0x10] sm:$0xff]  ;;  %v6595_v47 = vld [vmem:[#allocation3 + $0x48] sm:$0xff] }
  0x9c   : > { %435 = vst.msk [vmem:[#allocation2 + $0x69] sm:$0xff] %vm250_vm0, %v419_v18  ;;  %451 = vst.msk [vmem:[#allocation3 + $0x68] sm:$0xff] %vm250_vm0, %v419_v18  ;;  %v6506_v21 = vld [vmem:[#allocation2 + $0x40] sm:$0xff]  ;;  %v6516_v25 = vld [vmem:[#allocation2 + $0x48] sm:$0xff] }
  0x9d   : > { %467 = vst.msk [vmem:[#allocation4 + $0x67] sm:$0xff] %vm250_vm0, %v419_v18  ;;  %434 = vst.msk [vmem:[#allocation2 + $0x61] sm:$0xff] %vm250_vm0, %v418_v20  ;;  %5456 = vmatmul.mubr.msk.f32.gmra.mrb[6].mxu0 %vm250_vm0, %v6500_v19  ;;  %v387_v22 = vpop.permute.xlu1 %386  ;;  %v6646_v61 = vld [vmem:[#allocation4 + $0x30] sm:$0xff]  ;;  %v6650_v62 = vld [vmem:[#allocation4 + $0x38] sm:$0xff] }
  0x9e   : > { %450 = vst.msk [vmem:[#allocation3 + $0x60] sm:$0xff] %vm250_vm0, %v418_v20  ;;  %466 = vst.msk [vmem:[#allocation4 + $0x5f] sm:$0xff] %vm250_vm0, %v418_v20  ;;  %5458 = vmatprep.mubr.msk.f32.mxu0 %vm250_vm0, %v6506_v21  ;;  %v385_v23 = vpop.permute.xlu0 %384  ;;  %v421_v24 = vmax.f32 %v6410_v45, %v387_v22  ;;  %v6587_v45 = vld [vmem:[#allocation3 + $0x38] sm:$0xff]  ;;  %v6654_v63 = vld [vmem:[#allocation4 + $0x40] sm:$0xff]  ;;  %v6223_v20 = vmov 0  }
  0x9f   : > { %v420_v26 = vmax.f32 %v6414_v46, %v385_v23  ;;  %v6591_v46 = vld [vmem:[#allocation3 + $0x40] sm:$0xff]  ;;  %v6603_v49 = vld [vmem:[#allocation3 + $0x58] sm:$0xff]  ;;  %v473_v17 = vld [vmem:[%s7451_s5 + $0x8] sm:$0xff]  ;;  %6212 = vset.pattern.permute.xlu1 %v6223_v20  ;;  %6211 = vset.pattern.permute.xlu0 %v6223_v20 }
  0xa0   : > { %437 = vst.msk [vmem:[#allocation2 + $0x79] sm:$0xff] %vm250_vm0, %v421_v24  ;;  %453 = vst.msk [vmem:[#allocation3 + $0x78] sm:$0xff] %vm250_vm0, %v421_v24  ;;  %v6522_v27 = vld [vmem:[#allocation2 + $0x50] sm:$0xff]  ;;  %v6531_v30 = vld [vmem:[#allocation2 + $0x58] sm:$0xff]  ;;  %2556 = vperm.xlu1 %6212, %v473_v17  }
  0xa1   : > { %469 = vst.msk [vmem:[#allocation4 + $0x77] sm:$0xff] %vm250_vm0, %v421_v24  ;;  %436 = vst.msk [vmem:[#allocation2 + $0x71] sm:$0xff] %vm250_vm0, %v420_v26  ;;  %5459 = vmatmul.mubr.msk.f32.gmra.mrb[8].mxu0 %vm250_vm0, %v6516_v25  ;;  %v391_v28 = vpop.permute.xlu1 %390  ;;  %v6599_v48 = vld [vmem:[#allocation3 + $0x50] sm:$0xff]  ;;  %v6658_v1 = vld [vmem:[#allocation4 + $0x48] sm:$0xff] }
  0xa2   : > { %452 = vst.msk [vmem:[#allocation3 + $0x70] sm:$0xff] %vm250_vm0, %v420_v26  ;;  %468 = vst.msk [vmem:[#allocation4 + $0x6f] sm:$0xff] %vm250_vm0, %v420_v26  ;;  %5461 = vmatprep.mubr.msk.f32.mxu0 %vm250_vm0, %v6522_v27  ;;  %v389_v29 = vpop.permute.xlu0 %388  ;;  %v423_v31 = vmax.f32 %v6422_v51, %v391_v28  ;;  %v6662_v2 = vld [vmem:[#allocation4 + $0x50] sm:$0xff]  ;;  %v472_v18 = vld [vmem:[%s7451_s5] sm:$0xff] }
  0xa3   : > { %v422_v32 = vmax.f32 %v6426_v52, %v389_v29  ;;  %v6611_v51 = vld [vmem:[#allocation3 + $0x68] sm:$0xff]  ;;  %v6779_v22 = vld [vmem:[%s7447_s1 + $0x18] sm:$0xf]  ;;  %2551 = vperm.xlu0 %6211, %v472_v18   ;;  %v474_v23 = vld [vmem:[%s7451_s5 + $0x10] sm:$0xff] }
  0xa4   : > { %v6535_v33 = vld [vmem:[#allocation2 + $0x60] sm:$0xff]  ;;  %439 = vst.msk [vmem:[#allocation2 + $0x89] sm:$0xff] %vm250_vm0, %v423_v31  ;;  %455 = vst.msk [vmem:[#allocation3 + $0x88] sm:$0xff] %vm250_vm0, %v423_v31  ;;  %v6547_v34 = vld [vmem:[#allocation2 + $0x68] sm:$0xff]  ;;  %2561 = vperm.xlu1 %6212, %v474_v23  }
  0xa5   : > { %471 = vst.msk [vmem:[#allocation4 + $0x87] sm:$0xff] %vm250_vm0, %v423_v31  ;;  %438 = vst.msk [vmem:[#allocation2 + $0x81] sm:$0xff] %vm250_vm0, %v422_v32  ;;  %5462 = vmatmul.mubr.msk.f32.gmra.mrb[10].mxu0 %vm250_vm0, %v6531_v30  ;;  %v6607_v50 = vld [vmem:[#allocation3 + $0x60] sm:$0xff]  ;;  %v6666_v4 = vld [vmem:[#allocation4 + $0x58] sm:$0xff] }
  0xa6   : > { %454 = vst.msk [vmem:[#allocation3 + $0x80] sm:$0xff] %vm250_vm0, %v422_v32  ;;  %470 = vst.msk [vmem:[#allocation4 + $0x7f] sm:$0xff] %vm250_vm0, %v422_v32  ;;  %5464 = vmatprep.mubr.msk.f32.mxu0 %vm250_vm0, %v6535_v33  ;;  %v6670_v5 = vld [vmem:[#allocation4 + $0x60] sm:$0xff]  ;;  %v475_v24 = vld [vmem:[%s7451_s5 + $0x18] sm:$0xff] }
  0xa7   : > { %v6619_v54 = vld [vmem:[#allocation3 + $0x78] sm:$0xff]  ;;  %2566 = vperm.xlu0 %6211, %v475_v24   ;;  %v476_v26 = vld [vmem:[%s7451_s5 + $0x20] sm:$0xff]  ;;  %v477_v28 = vld [vmem:[%s7451_s5 + $0x28] sm:$0xff] }
  0xa8   : > { %v6549_v35 = vld [vmem:[#allocation2 + $0x70] sm:$0xff]  ;;  %v6555_v36 = vld [vmem:[#allocation2 + $0x78] sm:$0xff]  ;;  %2571 = vperm.xlu1 %6212, %v476_v26   ;;  %v480_v32 = vld [vmem:[%s7451_s5 + $0x40] sm:$0xff] }
  0xa9   : > { %5465 = vmatmul.mubr.msk.f32.gmra.mrb[12].mxu0 %vm250_vm0, %v6547_v34  ;;  %v6615_v52 = vld [vmem:[#allocation3 + $0x70] sm:$0xff]  ;;  %v6674_v6 = vld [vmem:[#allocation4 + $0x68] sm:$0xff]  ;;  %v479_v31 = vld [vmem:[%s7451_s5 + $0x38] sm:$0xff] }
  0xaa   : > { %5467 = vmatprep.mubr.msk.f32.mxu0 %vm250_vm0, %v6549_v35  ;;  %v6678_v7 = vld [vmem:[#allocation4 + $0x70] sm:$0xff] }
  0xab   : > { %v6723_v13 = vld [vmem:[#allocation3 + $0x88] sm:$0xff]  ;;  %2576 = vperm.xlu0 %6211, %v477_v28   ;;  %v478_v29 = vld [vmem:[%s7451_s5 + $0x30] sm:$0xff] }
  0xac   : > { %2581 = vperm.xlu1 %6212, %v478_v29  }
  0xad   : > { %5468 = vmatmul.mubr.msk.f32.gmra.mrb[14].mxu0 %vm250_vm0, %v6555_v36  ;;  %v6682_v10 = vld [vmem:[#allocation4 + $0x78] sm:$0xff]  ;;  %v6719_v12 = vld [vmem:[#allocation3 + $0x80] sm:$0xff] }
  0xae   : > { %5472 = vmatprep.mubr.msk.f32.mxu0 %vm250_vm0, %v725_v37  ;;  %v481_v37 = vld [vmem:[%s7451_s5 + $0x48] sm:$0xff] }
  0xaf   : > { %2586 = vperm.xlu0 %6211, %v479_v31  }
  0xb0   : > { %2591 = vperm.xlu1 %6212, %v480_v32  }
  0xb1   : > { %5473 = vmatmul.mubr.msk.f32.vlgmr.msra.gmra.mrb[0].mxu0 %vm250_vm0, %v726_v38  ;;  %v482_v38 = vld [vmem:[%s7451_s5 + $0x50] sm:$0xff] }
  0xb2   : > { %5497 = vmatpush3.msk.msra.mxu0 %vm560_vm2, %v6431_v53  ;;  %5475 = vmatprep.mubr.msk.f32.mxu0 %vm250_vm0, %v6564_v40  ;;  %v955_v53 = vld [vmem:[#allocation4] sm:$0xff] }
  0xb3   : > { %5522 = vmatprep.subr.msk.mxu0 %vm560_vm2, %v4875_v39  ;;  %2596 = vperm.xlu0 %6211, %v481_v37  }
  0xb4   : > { %2601 = vperm.xlu1 %6212, %v482_v38  }
  0xb5   : > { %5476 = vmatmul.mubr.msk.f32.gmra.mrb[2].mxu0 %vm250_vm0, %v6571_v41 }
  0xb6   : > { %5478 = vmatprep.mubr.msk.f32.mxu0 %vm250_vm0, %v6575_v42 }
  0xb9   : > { %5479 = vmatmul.mubr.msk.f32.gmra.mrb[4].mxu0 %vm250_vm0, %v6579_v43 }
  0xba   : > { %5481 = vmatprep.mubr.msk.f32.mxu0 %vm250_vm0, %v6583_v44 }
  0xbd   : > { %5482 = vmatmul.mubr.msk.f32.gmra.mrb[6].mxu0 %vm250_vm0, %v6587_v45 }
  0xbe   : > { %5484 = vmatprep.mubr.msk.f32.mxu0 %vm250_vm0, %v6591_v46 }
  0xc1   : > { %5485 = vmatmul.mubr.msk.f32.gmra.mrb[8].mxu0 %vm250_vm0, %v6595_v47 }
  0xc2   : > { %5487 = vmatprep.mubr.msk.f32.mxu0 %vm250_vm0, %v6599_v48 }
  0xc5   : > { %5488 = vmatmul.mubr.msk.f32.gmra.mrb[10].mxu0 %vm250_vm0, %v6603_v49 }
  0xc6   : > { %5490 = vmatprep.mubr.msk.f32.mxu0 %vm250_vm0, %v6607_v50 }
  0xc9   : > { %5491 = vmatmul.mubr.msk.f32.gmra.mrb[12].mxu0 %vm250_vm0, %v6611_v51 }
  0xca   : > { %5493 = vmatprep.mubr.msk.f32.mxu0 %vm250_vm0, %v6615_v52 }
  0xcd   : > { %5494 = vmatmul.mubr.msk.f32.gmra.mrb[14].mxu0 %vm250_vm0, %v6619_v54 }
  0xce   : > { %5498 = vmatprep.mubr.msk.f32.mxu0 %vm250_vm0, %v955_v53  ;;  %v486_v53 = vld [vmem:[%s7451_s5 + $0x70] sm:$0xff] }
  0xd1   : > { %5499 = vmatmul.mubr.msk.f32.vlgmr.msra.gmra.mrb[0].mxu0 %vm250_vm0, %v956_v55  ;;  %v1627_v55 = vld [vmem:[#allocation4 + $0x80] sm:$0xff] }
  0xd2   : > { %5523 = vmatpush3.msk.msra.mxu0 %vm560_vm2, %v4875_v39  ;;  %5501 = vmatprep.mubr.msk.f32.mxu0 %vm250_vm0, %v6628_v57  ;;  %v483_v39 = vld [vmem:[%s7451_s5 + $0x58] sm:$0xff] }
  0xd3   : > { %5548 = vmatprep.subr.msk.mxu0 %vm560_vm2, %v4874_v56  ;;  %2606 = vperm.xlu0 %6211, %v483_v39  }
  0xd5   : > { %5502 = vmatmul.mubr.msk.f32.gmra.mrb[2].mxu0 %vm250_vm0, %v6634_v58 }
  0xd6   : > { %5504 = vmatprep.mubr.msk.f32.mxu0 %vm250_vm0, %v6638_v59 }
  0xd9   : > { %5505 = vmatmul.mubr.msk.f32.gmra.mrb[4].mxu0 %vm250_vm0, %v6642_v60 }
  0xda   : > { %5507 = vmatprep.mubr.msk.f32.mxu0 %vm250_vm0, %v6646_v61 }
  0xdd   : > { %5508 = vmatmul.mubr.msk.f32.gmra.mrb[6].mxu0 %vm250_vm0, %v6650_v62 }
  0xde   : > { %5510 = vmatprep.mubr.msk.f32.mxu0 %vm250_vm0, %v6654_v63 }
  0xe1   : > { %5511 = vmatmul.mubr.msk.f32.gmra.mrb[8].mxu0 %vm250_vm0, %v6658_v1 }
  0xe2   : > { %5513 = vmatprep.mubr.msk.f32.mxu0 %vm250_vm0, %v6662_v2 }
  0xe5   : > { %5514 = vmatmul.mubr.msk.f32.gmra.mrb[10].mxu0 %vm250_vm0, %v6666_v4 }
  0xe6   : > { %5516 = vmatprep.mubr.msk.f32.mxu0 %vm250_vm0, %v6670_v5 }
  0xe9   : > { %5517 = vmatmul.mubr.msk.f32.gmra.mrb[12].mxu0 %vm250_vm0, %v6674_v6 }
  0xea   : > { %5519 = vmatprep.mubr.msk.f32.mxu0 %vm250_vm0, %v6678_v7 }
  0xed   : > { %5520 = vmatmul.mubr.msk.f32.gmra.mrb[14].mxu0 %vm250_vm0, %v6682_v10 }
  0xee   : > { %5524 = vmatprep.mubr.msk.f32.mxu0 %vm250_vm0, %v6564_v40  ;;  %v484_v40 = vld [vmem:[%s7451_s5 + $0x60] sm:$0xff] }
  0xef   : > { %2611 = vperm.xlu1 %6212, %v484_v40  }
  0xf1   : > { %5525 = vmatmul.mubr.msk.f32.vlgmr.msra.gmra.mrb[0].mxu0 %vm250_vm0, %v6571_v41  ;;  %v485_v41 = vld [vmem:[%s7451_s5 + $0x68] sm:$0xff] }
  0xf2   : > { %5549 = vmatpush3.msk.msra.mxu0 %vm560_vm2, %v4874_v56  ;;  %5527 = vmatprep.mubr.msk.f32.mxu0 %vm250_vm0, %v6575_v42  ;;  %v487_v56 = vld [vmem:[%s7451_s5 + $0x78] sm:$0xff] }
  0xf3   : > { %5574 = vmatprep.subr.msk.mxu0 %vm560_vm2, %v4910_v11  ;;  %2616 = vperm.xlu0 %6211, %v485_v41  }
  0xf4   : > { %2621 = vperm.xlu1 %6212, %v486_v53  }
  0xf5   : > { %5528 = vmatmul.mubr.msk.f32.gmra.mrb[2].mxu0 %vm250_vm0, %v6579_v43 }
  0xf6   : > { %5530 = vmatprep.mubr.msk.f32.mxu0 %vm250_vm0, %v6583_v44 }
  0xf7   : > { %2626 = vperm.xlu0 %6211, %v487_v56  }
  0xf9   : > { %5531 = vmatmul.mubr.msk.f32.gmra.mrb[4].mxu0 %vm250_vm0, %v6587_v45 }
  0xfa   : > { %5533 = vmatprep.mubr.msk.f32.mxu0 %vm250_vm0, %v6591_v46 }
  0xfd   : > { %5534 = vmatmul.mubr.msk.f32.gmra.mrb[6].mxu0 %vm250_vm0, %v6595_v47 }
  0xfe   : > { %5536 = vmatprep.mubr.msk.f32.mxu0 %vm250_vm0, %v6599_v48 }
 0x101   : > { %5537 = vmatmul.mubr.msk.f32.gmra.mrb[8].mxu0 %vm250_vm0, %v6603_v49 }
 0x102   : > { %5539 = vmatprep.mubr.msk.f32.mxu0 %vm250_vm0, %v6607_v50 }
 0x105   : > { %5540 = vmatmul.mubr.msk.f32.gmra.mrb[10].mxu0 %vm250_vm0, %v6611_v51 }
 0x106   : > { %5542 = vmatprep.mubr.msk.f32.mxu0 %vm250_vm0, %v6615_v52 }
 0x109   : > { %5543 = vmatmul.mubr.msk.f32.gmra.mrb[12].mxu0 %vm250_vm0, %v6619_v54 }
 0x10a   : > { %5545 = vmatprep.mubr.msk.f32.mxu0 %vm250_vm0, %v6719_v12 }
 0x10d   : > { %5546 = vmatmul.mubr.msk.f32.gmra.mrb[14].mxu0 %vm250_vm0, %v6723_v13 }
 0x10e   : > { %5550 = vmatprep.mubr.msk.f32.mxu0 %vm250_vm0, %v6460_v3  ;;  %v6760_v3 = vld [vmem:[#allocation2 + $0x80] sm:$0xff] }
 0x111   : > { %5551 = vmatmul.mubr.msk.f32.vlgmr.msra.gmra.mrb[0].mxu0 %vm250_vm0, %v6472_v8  ;;  %v6764_v8 = vld [vmem:[#allocation2 + $0x88] sm:$0xff] }
 0x112   : > { %5575 = vmatpush3.msk.msra.mxu0 %vm560_vm2, %v4910_v11  ;;  %5553 = vmatprep.mubr.msk.f32.mxu0 %vm250_vm0, %v6474_v9 }
 0x113   : > { %5600 = vmatprep.subr.msk.mxu0 %vm560_vm2, %v4929_v16 }
 0x115   : > { %5554 = vmatmul.mubr.msk.f32.gmra.mrb[2].mxu0 %vm250_vm0, %v6488_v14 }
 0x116   : > { %5556 = vmatprep.mubr.msk.f32.mxu0 %vm250_vm0, %v6490_v15 }
 0x119   : > { %5557 = vmatmul.mubr.msk.f32.gmra.mrb[4].mxu0 %vm250_vm0, %v6500_v19 }
 0x11a   : > { %5559 = vmatprep.mubr.msk.f32.mxu0 %vm250_vm0, %v6506_v21 }
 0x11d   : > { %5560 = vmatmul.mubr.msk.f32.gmra.mrb[6].mxu0 %vm250_vm0, %v6516_v25 }
 0x11e   : > { %5562 = vmatprep.mubr.msk.f32.mxu0 %vm250_vm0, %v6522_v27 }
 0x121   : > { %5563 = vmatmul.mubr.msk.f32.gmra.mrb[8].mxu0 %vm250_vm0, %v6531_v30 }
 0x122   : > { %5565 = vmatprep.mubr.msk.f32.mxu0 %vm250_vm0, %v6535_v33 }
 0x125   : > { %5566 = vmatmul.mubr.msk.f32.gmra.mrb[10].mxu0 %vm250_vm0, %v6547_v34 }
 0x126   : > { %5568 = vmatprep.mubr.msk.f32.mxu0 %vm250_vm0, %v6549_v35 }
 0x129   : > { %5569 = vmatmul.mubr.msk.f32.gmra.mrb[12].mxu0 %vm250_vm0, %v6555_v36 }
 0x12a   : > { %5571 = vmatprep.mubr.msk.f32.mxu0 %vm250_vm0, %v6760_v3 }
 0x12d   : > { %5572 = vmatmul.mubr.msk.f32.gmra.mrb[14].mxu0 %vm250_vm0, %v6764_v8 }
 0x12e   : > { %5576 = vmatprep.mubr.msk.f32.mxu0 %vm250_vm0, %v6628_v57  ;;  %v1628_v57 = vld [vmem:[#allocation4 + $0x88] sm:$0xff] }
 0x131   : > { %5577 = vmatmul.mubr.msk.f32.vlgmr.msra.gmra.mrb[0].mxu0 %vm250_vm0, %v6634_v58  ;;  %v4964_v58 = vld [vmem:[%s7447_s1 + $0x20] sm:$0xf] }
 0x132   : > { %5601 = vmatpush3.msk.msra.mxu0 %vm560_vm2, %v4929_v16  ;;  %5579 = vmatprep.mubr.msk.f32.mxu0 %vm250_vm0, %v6638_v59 }
 0x133   : > { %5626 = vmatprep.subr.msk.mxu0 %vm560_vm2, %v6779_v22 }
 0x135   : > { %5580 = vmatmul.mubr.msk.f32.gmra.mrb[2].mxu0 %vm250_vm0, %v6642_v60 }
 0x136   : > { %5582 = vmatprep.mubr.msk.f32.mxu0 %vm250_vm0, %v6646_v61 }
 0x139   : > { %5583 = vmatmul.mubr.msk.f32.gmra.mrb[4].mxu0 %vm250_vm0, %v6650_v62 }
 0x13a   : > { %5585 = vmatprep.mubr.msk.f32.mxu0 %vm250_vm0, %v6654_v63 }
 0x13d   : > { %5586 = vmatmul.mubr.msk.f32.gmra.mrb[6].mxu0 %vm250_vm0, %v6658_v1 }
 0x13e   : > { %5588 = vmatprep.mubr.msk.f32.mxu0 %vm250_vm0, %v6662_v2 }
 0x141   : > { %5589 = vmatmul.mubr.msk.f32.gmra.mrb[8].mxu0 %vm250_vm0, %v6666_v4 }
 0x142   : > { %5591 = vmatprep.mubr.msk.f32.mxu0 %vm250_vm0, %v6670_v5 }
 0x145   : > { %5592 = vmatmul.mubr.msk.f32.gmra.mrb[10].mxu0 %vm250_vm0, %v6674_v6 }
 0x146   : > { %5594 = vmatprep.mubr.msk.f32.mxu0 %vm250_vm0, %v6678_v7 }
 0x149   : > { %5595 = vmatmul.mubr.msk.f32.gmra.mrb[12].mxu0 %vm250_vm0, %v6682_v10 }
 0x14a   : > { %5597 = vmatprep.mubr.msk.f32.mxu0 %vm250_vm0, %v1627_v55 }
 0x14d   : > { %5598 = vmatmul.mubr.msk.f32.gmra.mrb[14].mxu0 %vm250_vm0, %v1628_v57 }
 0x14e   : > { %5602 = vmatprep.mubr.msk.f32.mxu0 %vm250_vm0, %v6575_v42  ;;  %v1875_v42 = vld [vmem:[#allocation3 + $0x90] sm:$0xff] }
 0x151   : > { %5603 = vmatmul.mubr.msk.f32.vlgmr.msra.gmra.mrb[0].mxu0 %vm250_vm0, %v6579_v43  ;;  %v1876_v43 = vld [vmem:[#allocation3 + $0x98] sm:$0xff] }
 0x152   : > { %5627 = vmatpush3.msk.msra.mxu0 %vm560_vm2, %v6779_v22  ;;  %5605 = vmatprep.mubr.msk.f32.mxu0 %vm250_vm0, %v6583_v44  ;;  %v7005_v44 = vld [vmem:[%s7448_s2] ss:$0 sm:$0xff] }
 0x153   : > { %5652 = vmatprep.subr.msk.mxu0 %vm560_vm2, %v4964_v58 }
 0x155   : > { %5606 = vmatmul.mubr.msk.f32.gmra.mrb[2].mxu0 %vm250_vm0, %v6587_v45 }
 0x156   : > { %5608 = vmatprep.mubr.msk.f32.mxu0 %vm250_vm0, %v6591_v46 }
 0x159   : > { %5609 = vmatmul.mubr.msk.f32.gmra.mrb[4].mxu0 %vm250_vm0, %v6595_v47 }
 0x15a   : > { %5611 = vmatprep.mubr.msk.f32.mxu0 %vm250_vm0, %v6599_v48 }
 0x15d   : > { %5612 = vmatmul.mubr.msk.f32.gmra.mrb[6].mxu0 %vm250_vm0, %v6603_v49 }
 0x15e   : > { %5614 = vmatprep.mubr.msk.f32.mxu0 %vm250_vm0, %v6607_v50 }
 0x161   : > { %5615 = vmatmul.mubr.msk.f32.gmra.mrb[8].mxu0 %vm250_vm0, %v6611_v51 }
 0x162   : > { %5617 = vmatprep.mubr.msk.f32.mxu0 %vm250_vm0, %v6615_v52 }
 0x165   : > { %5618 = vmatmul.mubr.msk.f32.gmra.mrb[10].mxu0 %vm250_vm0, %v6619_v54 }
 0x166   : > { %5620 = vmatprep.mubr.msk.f32.mxu0 %vm250_vm0, %v6719_v12 }
 0x169   : > { %5621 = vmatmul.mubr.msk.f32.gmra.mrb[12].mxu0 %vm250_vm0, %v6723_v13 }
 0x16a   : > { %5623 = vmatprep.mubr.msk.f32.mxu0 %vm250_vm0, %v1875_v42 }
 0x16d   : > { %5624 = vmatmul.mubr.msk.f32.gmra.mrb[14].mxu0 %vm250_vm0, %v1876_v43 }
 0x16e   : > { %5628 = vmatprep.mubr.msk.f32.mxu0 %vm250_vm0, %v6474_v9  ;;  %v1857_v9 = vld [vmem:[#allocation2 + $0x90] sm:$0xff] }
 0x171   : > { %5629 = vmatmul.mubr.msk.f32.vlgmr.msra.gmra.mrb[0].mxu0 %vm250_vm0, %v6488_v14  ;;  %v1858_v14 = vld [vmem:[#allocation2 + $0x98] sm:$0xff] }
 0x172   : > { %5653 = vmatpush3.msk.msra.mxu0 %vm560_vm2, %v4964_v58  ;;  %5631 = vmatprep.mubr.msk.f32.mxu0 %vm250_vm0, %v6490_v15  ;;  %v2285_v15 = vld [vmem:[#allocation4 + $0x90] sm:$0xff] }
 0x175   : > { %5632 = vmatmul.mubr.msk.f32.gmra.mrb[2].mxu0 %vm250_vm0, %v6500_v19  ;;  %v2286_v19 = vld [vmem:[#allocation4 + $0x98] sm:$0xff] }
 0x176   : > { %5634 = vmatprep.mubr.msk.f32.mxu0 %vm250_vm0, %v6506_v21  ;;  %v2716_v21 = vld [vmem:[%s7449_s3] sm:$0xff] }
 0x177   : > { %5678 = vmatprep.subr.mxu1 %v2716_v21 }
 0x178   : > { %5679 = vmatpush3.msra.mxu1 %v2716_v21 }
 0x179   : > { %5635 = vmatmul.mubr.msk.f32.gmra.mrb[4].mxu0 %vm250_vm0, %v6516_v25  ;;  %v2700_v25 = vld [vmem:[#allocation5] sm:$0xff] }
 0x17a   : > { %5637 = vmatprep.mubr.msk.f32.mxu0 %vm250_vm0, %v6522_v27  ;;  %5680 = vmatprep.mubr.msk.f32.mxu1 %vm273_vm3, %v2700_v25  ;;  %v2701_v27 = vld [vmem:[#allocation5 + $0x8] sm:$0xff] }
 0x17b   : > { %5681 = vmatmul.mubr.msk.f32.vlgmr.msra.gmra.mrb[0].mxu1 %vm273_vm3, %v2701_v27 }
 0x17d   : > { %5638 = vmatmul.mubr.msk.f32.gmra.mrb[6].mxu0 %vm250_vm0, %v6531_v30  ;;  %v4999_v30 = vld [vmem:[%s7449_s3 + $0x8] sm:$0xff] }
 0x17e   : > { %5640 = vmatprep.mubr.msk.f32.mxu0 %vm250_vm0, %v6535_v33  ;;  %5704 = vmatprep.subr.mxu1 %v4999_v30  ;;  %v2552_v33 = vpop.permute.xlu0 %2551 }
 0x17f   : > { %5705 = vmatpush3.msra.mxu1 %v4999_v30 }
 0x180   : > { %5730 = vmatprep.subr.mxu1 %v6999_v0 }
 0x181   : > { %5641 = vmatmul.mubr.msk.f32.gmra.mrb[8].mxu0 %vm250_vm0, %v6547_v34  ;;  %v2557_v34 = vpop.permute.xlu1 %2556 }
 0x182   : > { %5643 = vmatprep.mubr.msk.f32.mxu0 %vm250_vm0, %v6549_v35  ;;  %v2567_v35 = vpop.permute.xlu0 %2566 }
 0x185   : > { %5644 = vmatmul.mubr.msk.f32.gmra.mrb[10].mxu0 %vm250_vm0, %v6555_v36  ;;  %v2562_v36 = vpop.permute.xlu1 %2561 }
 0x186   : > { %5646 = vmatprep.mubr.msk.f32.mxu0 %vm250_vm0, %v6760_v3  ;;  %v2577_v48 = vpop.permute.xlu0 %2576 }
 0x189   : > { %5647 = vmatmul.mubr.msk.f32.gmra.mrb[12].mxu0 %vm250_vm0, %v6764_v8  ;;  %v2572_v50 = vpop.permute.xlu1 %2571 }
 0x18a   : > { %5649 = vmatprep.mubr.msk.f32.mxu0 %vm250_vm0, %v1857_v9 }
 0x18d   : > { %5650 = vmatmul.mubr.msk.f32.gmra.mrb[14].mxu0 %vm250_vm0, %v1858_v14 }
 0x18e   : > { %5654 = vmatprep.mubr.msk.f32.mxu0 %vm250_vm0, %v6638_v59 }
 0x191   : > { %5655 = vmatmul.mubr.msk.f32.vlgmr.msra.gmra.mrb[0].mxu0 %vm250_vm0, %v6642_v60 }
 0x192   : > { %5657 = vmatprep.mubr.msk.f32.mxu0 %vm250_vm0, %v6646_v61 }
 0x195   : > { %5658 = vmatmul.mubr.msk.f32.gmra.mrb[2].mxu0 %vm250_vm0, %v6650_v62 }
 0x196   : > { %5660 = vmatprep.mubr.msk.f32.mxu0 %vm250_vm0, %v6654_v63 }
 0x199   : > { %5661 = vmatmul.mubr.msk.f32.gmra.mrb[4].mxu0 %vm250_vm0, %v6658_v1 }
 0x19a   : > { %5663 = vmatprep.mubr.msk.f32.mxu0 %vm250_vm0, %v6662_v2  ;;  %v2587_v2 = vpop.permute.xlu0 %2586 }
 0x19d   : > { %5664 = vmatmul.mubr.msk.f32.gmra.mrb[6].mxu0 %vm250_vm0, %v6666_v4 }
 0x19e   : > { %5666 = vmatprep.mubr.msk.f32.mxu0 %vm250_vm0, %v6670_v5  ;;  %v2597_v22 = vpop.permute.xlu0 %2596 }
 0x1a1   : > { %5667 = vmatmul.mubr.msk.f32.gmra.mrb[8].mxu0 %vm250_vm0, %v6674_v6  ;;  %v2582_v6 = vpop.permute.xlu1 %2581 }
 0x1a2   : > { %5669 = vmatprep.mubr.msk.f32.mxu0 %vm250_vm0, %v6678_v7  ;;  %v2607_v58 = vpop.permute.xlu0 %2606 }
 0x1a5   : > { %5670 = vmatmul.mubr.msk.f32.gmra.mrb[10].mxu0 %vm250_vm0, %v6682_v10  ;;  %v2592_v26 = vpop.permute.xlu1 %2591 }
 0x1a6   : > { %5672 = vmatprep.mubr.msk.f32.mxu0 %vm250_vm0, %v1627_v55 }
 0x1a9   : > { %5673 = vmatmul.mubr.msk.f32.gmra.mrb[12].mxu0 %vm250_vm0, %v1628_v57  ;;  %v2602_v9 = vpop.permute.xlu1 %2601 }
 0x1aa   : > { %5675 = vmatprep.mubr.msk.f32.mxu0 %vm250_vm0, %v2285_v15 }
 0x1ad   : > { %5676 = vmatmul.mubr.msk.f32.gmra.mrb[14].mxu0 %vm250_vm0, %v2286_v19 }
 0x264   : > { %v5656_v45 = vpop.f32.mrb[0].mxu0 }
 0x265   : > { %v5912_v46 = vadd.f32 %v5656_v45, %v7005_v44  ;;  %v2406_v47 = vpop.f32.mrb[1].mxu0 }
 0x266   : > { %v5913_v49 = vadd.f32 %v7005_v44, %v2406_v47  ;;  %v2617_v47 = vpop.permute.xlu0 %2616 }
 0x267   : > { %v2534_v51 = vmax.f32 %v5912_v46, 0.0 }
 0x268   : > { %v2533_v52 = vmax.f32 %v5913_v49, 0.0  ;;  %v5659_v54 = vpop.f32.mrb[2].mxu0 }
 0x269   : > { %v2630_v59 = vmul.f32 %v2557_v34, %v2534_v51  ;;  %v5914_v60 = vadd.f32 %v5659_v54, %v7005_v44  ;;  %v2416_v61 = vpop.f32.mrb[3].mxu0 }
 0x26a   : > { %v2629_v62 = vmul.f32 %v2552_v33, %v2533_v52  ;;  %v5915_v63 = vadd.f32 %v7005_v44, %v2416_v61 }
 0x26b   : > { %2646 = vst.msk [vmem:[#allocation5 + $0x19] sm:$0xff] %vm273_vm3, %v2630_v59  ;;  %2662 = vst.msk [vmem:[#allocation6 + $0x18] sm:$0xff] %vm273_vm3, %v2630_v59  ;;  %v2536_v1 = vmax.f32 %v5914_v60, 0.0 }
 0x26c   : > { %2678 = vst.msk [vmem:[#allocation7 + $0x17] sm:$0xff] %vm273_vm3, %v2630_v59  ;;  %2645 = vst.msk [vmem:[#allocation5 + $0x11] sm:$0xff] %vm273_vm3, %v2629_v62  ;;  %v2535_v4 = vmax.f32 %v5915_v63, 0.0  ;;  %v5662_v5 = vpop.f32.mrb[4].mxu0 }
 0x26d   : > { %2661 = vst.msk [vmem:[#allocation6 + $0x10] sm:$0xff] %vm273_vm3, %v2629_v62  ;;  %2677 = vst.msk [vmem:[#allocation7 + $0xf] sm:$0xff] %vm273_vm3, %v2629_v62  ;;  %v2632_v7 = vmul.f32 %v2567_v35, %v2536_v1  ;;  %v5916_v10 = vadd.f32 %v5662_v5, %v7005_v44  ;;  %v2426_v11 = vpop.f32.mrb[5].mxu0 }
 0x26e   : > { %v2631_v12 = vmul.f32 %v2562_v36, %v2535_v4  ;;  %v5917_v13 = vadd.f32 %v7005_v44, %v2426_v11 }
 0x26f   : > { %2648 = vst.msk [vmem:[#allocation5 + $0x29] sm:$0xff] %vm273_vm3, %v2632_v7  ;;  %2664 = vst.msk [vmem:[#allocation6 + $0x28] sm:$0xff] %vm273_vm3, %v2632_v7  ;;  %v2538_v16 = vmax.f32 %v5916_v10, 0.0 }
 0x270   : > { %2680 = vst.msk [vmem:[#allocation7 + $0x27] sm:$0xff] %vm273_vm3, %v2632_v7  ;;  %2647 = vst.msk [vmem:[#allocation5 + $0x21] sm:$0xff] %vm273_vm3, %v2631_v12  ;;  %v2537_v3 = vmax.f32 %v5917_v13, 0.0  ;;  %v5665_v8 = vpop.f32.mrb[6].mxu0  ;;  %v2627_v7 = vpop.permute.xlu0 %2626 }
 0x271   : > { %2663 = vst.msk [vmem:[#allocation6 + $0x20] sm:$0xff] %vm273_vm3, %v2631_v12  ;;  %2679 = vst.msk [vmem:[#allocation7 + $0x1f] sm:$0xff] %vm273_vm3, %v2631_v12  ;;  %v2634_v17 = vmul.f32 %v2577_v48, %v2538_v16  ;;  %v5918_v18 = vadd.f32 %v5665_v8, %v7005_v44  ;;  %v2436_v20 = vpop.f32.mrb[7].mxu0 }
 0x272   : > { %v2633_v23 = vmul.f32 %v2572_v50, %v2537_v3  ;;  %v5919_v24 = vadd.f32 %v7005_v44, %v2436_v20  ;;  %v2612_v50 = vpop.permute.xlu1 %2611  ;;  %v5034_v20 = vld [vmem:[%s7449_s3 + $0x20] sm:$0xff] }
 0x273   : > { %2650 = vst.msk [vmem:[#allocation5 + $0x39] sm:$0xff] %vm273_vm3, %v2634_v17  ;;  %2666 = vst.msk [vmem:[#allocation6 + $0x38] sm:$0xff] %vm273_vm3, %v2634_v17  ;;  %v2540_v28 = vmax.f32 %v5918_v18, 0.0  ;;  %v7030_v29 = vld [vmem:[#allocation5 + $0x10] sm:$0xff]  ;;  %v7032_v31 = vld [vmem:[#allocation5 + $0x18] sm:$0xff] }
 0x274   : > { %2682 = vst.msk [vmem:[#allocation7 + $0x37] sm:$0xff] %vm273_vm3, %v2634_v17  ;;  %2649 = vst.msk [vmem:[#allocation5 + $0x31] sm:$0xff] %vm273_vm3, %v2633_v23  ;;  %v2539_v32 = vmax.f32 %v5919_v24, 0.0  ;;  %v5668_v37 = vpop.f32.mrb[8].mxu0  ;;  %5683 = vmatprep.mubr.msk.f32.mxu1 %vm273_vm3, %v7030_v29  ;;  %v2926_v17 = vld [vmem:[#allocation6] sm:$0xff]  ;;  %v2927_v18 = vld [vmem:[#allocation6 + $0x8] sm:$0xff] }
 0x275   : > { %2665 = vst.msk [vmem:[#allocation6 + $0x30] sm:$0xff] %vm273_vm3, %v2633_v23  ;;  %2681 = vst.msk [vmem:[#allocation7 + $0x2f] sm:$0xff] %vm273_vm3, %v2633_v23  ;;  %v2636_v38 = vmul.f32 %v2587_v2, %v2540_v28  ;;  %v5920_v39 = vadd.f32 %v5668_v37, %v7005_v44  ;;  %v2446_v40 = vpop.f32.mrb[9].mxu0  ;;  %5684 = vmatmul.mubr.msk.f32.gmra.mrb[2].mxu1 %vm273_vm3, %v7032_v31  ;;  %v7137_v23 = vld [vmem:[#allocation6 + $0x18] sm:$0xff] }
 0x276   : > { %v2635_v41 = vmul.f32 %v2582_v6, %v2539_v32  ;;  %v5921_v53 = vadd.f32 %v7005_v44, %v2446_v40 }
 0x277   : > { %2652 = vst.msk [vmem:[#allocation5 + $0x49] sm:$0xff] %vm273_vm3, %v2636_v38  ;;  %2668 = vst.msk [vmem:[#allocation6 + $0x48] sm:$0xff] %vm273_vm3, %v2636_v38  ;;  %v2542_v55 = vmax.f32 %v5920_v39, 0.0  ;;  %v7046_v56 = vld [vmem:[#allocation5 + $0x20] sm:$0xff]  ;;  %v7048_v57 = vld [vmem:[#allocation5 + $0x28] sm:$0xff] }
 0x278   : > { %2684 = vst.msk [vmem:[#allocation7 + $0x47] sm:$0xff] %vm273_vm3, %v2636_v38  ;;  %2651 = vst.msk [vmem:[#allocation5 + $0x41] sm:$0xff] %vm273_vm3, %v2635_v41  ;;  %v2541_v42 = vmax.f32 %v5921_v53, 0.0  ;;  %v5671_v43 = vpop.f32.mrb[10].mxu0  ;;  %5686 = vmatprep.mubr.msk.f32.mxu1 %vm273_vm3, %v7046_v56  ;;  %v7141_v24 = vld [vmem:[#allocation6 + $0x20] sm:$0xff] }
 0x279   : > { %2667 = vst.msk [vmem:[#allocation6 + $0x40] sm:$0xff] %vm273_vm3, %v2635_v41  ;;  %2683 = vst.msk [vmem:[#allocation7 + $0x3f] sm:$0xff] %vm273_vm3, %v2635_v41  ;;  %v2638_v14 = vmul.f32 %v2597_v22, %v2542_v55  ;;  %v5922_v15 = vadd.f32 %v5671_v43, %v7005_v44  ;;  %v2456_v19 = vpop.f32.mrb[11].mxu0  ;;  %5687 = vmatmul.mubr.msk.f32.gmra.mrb[4].mxu1 %vm273_vm3, %v7048_v57  ;;  %v7132_v22 = vld [vmem:[#allocation6 + $0x10] sm:$0xff]  ;;  %v3153_v55 = vld [vmem:[#allocation7] sm:$0xff] }
 0x27a   : > { %v2637_v21 = vmul.f32 %v2592_v26, %v2541_v42  ;;  %v5923_v25 = vadd.f32 %v7005_v44, %v2456_v19  ;;  %v7145_v26 = vld [vmem:[#allocation6 + $0x28] sm:$0xff]  ;;  %v7153_v28 = vld [vmem:[#allocation6 + $0x38] sm:$0xff] }
 0x27b   : > { %2654 = vst.msk [vmem:[#allocation5 + $0x59] sm:$0xff] %vm273_vm3, %v2638_v14  ;;  %2670 = vst.msk [vmem:[#allocation6 + $0x58] sm:$0xff] %vm273_vm3, %v2638_v14  ;;  %v2544_v27 = vmax.f32 %v5922_v15, 0.0  ;;  %v7062_v30 = vld [vmem:[#allocation5 + $0x30] sm:$0xff]  ;;  %v7064_v33 = vld [vmem:[#allocation5 + $0x38] sm:$0xff] }
 0x27c   : > { %2686 = vst.msk [vmem:[#allocation7 + $0x57] sm:$0xff] %vm273_vm3, %v2638_v14  ;;  %2653 = vst.msk [vmem:[#allocation5 + $0x51] sm:$0xff] %vm273_vm3, %v2637_v21  ;;  %v2543_v34 = vmax.f32 %v5923_v25, 0.0  ;;  %v5674_v35 = vpop.f32.mrb[12].mxu0  ;;  %5689 = vmatprep.mubr.msk.f32.mxu1 %vm273_vm3, %v7062_v30  ;;  %v3154_v42 = vld [vmem:[#allocation7 + $0x8] sm:$0xff]  ;;  %v5033_v43 = vld [vmem:[%s7449_s3 + $0x18] sm:$0xff] }
 0x27d   : > { %2669 = vst.msk [vmem:[#allocation6 + $0x50] sm:$0xff] %vm273_vm3, %v2637_v21  ;;  %2685 = vst.msk [vmem:[#allocation7 + $0x4f] sm:$0xff] %vm273_vm3, %v2637_v21  ;;  %v2640_v36 = vmul.f32 %v2607_v58, %v2544_v27  ;;  %v5924_v45 = vadd.f32 %v5674_v35, %v7005_v44  ;;  %v2466_v46 = vpop.f32.mrb[13].mxu0  ;;  %5690 = vmatmul.mubr.msk.f32.gmra.mrb[6].mxu1 %vm273_vm3, %v7064_v33  ;;  %v7198_v14 = vld [vmem:[#allocation7 + $0x18] sm:$0xff]  ;;  %v7202_v15 = vld [vmem:[#allocation7 + $0x20] sm:$0xff] }
 0x27e   : > { %v2639_v48 = vmul.f32 %v2602_v9, %v2543_v34  ;;  %v5925_v49 = vadd.f32 %v7005_v44, %v2466_v46  ;;  %v7161_v37 = vld [vmem:[#allocation6 + $0x48] sm:$0xff]  ;;  %v7194_v9 = vld [vmem:[#allocation7 + $0x10] sm:$0xff] }
 0x27f   : > { %2656 = vst.msk [vmem:[#allocation5 + $0x69] sm:$0xff] %vm273_vm3, %v2640_v36  ;;  %2672 = vst.msk [vmem:[#allocation6 + $0x68] sm:$0xff] %vm273_vm3, %v2640_v36  ;;  %v2546_v51 = vmax.f32 %v5924_v45, 0.0  ;;  %v7078_v52 = vld [vmem:[#allocation5 + $0x40] sm:$0xff]  ;;  %v7080_v54 = vld [vmem:[#allocation5 + $0x48] sm:$0xff] }
 0x280   : > { %2688 = vst.msk [vmem:[#allocation7 + $0x67] sm:$0xff] %vm273_vm3, %v2640_v36  ;;  %2655 = vst.msk [vmem:[#allocation5 + $0x61] sm:$0xff] %vm273_vm3, %v2639_v48  ;;  %v2545_v59 = vmax.f32 %v5925_v49, 0.0  ;;  %v5677_v60 = vpop.f32.mrb[14].mxu0  ;;  %5692 = vmatprep.mubr.msk.f32.mxu1 %vm273_vm3, %v7078_v52  ;;  %v7157_v32 = vld [vmem:[#allocation6 + $0x40] sm:$0xff]  ;;  %v7206_v19 = vld [vmem:[#allocation7 + $0x28] sm:$0xff] }
 0x281   : > { %2671 = vst.msk [vmem:[#allocation6 + $0x60] sm:$0xff] %vm273_vm3, %v2639_v48  ;;  %2687 = vst.msk [vmem:[#allocation7 + $0x5f] sm:$0xff] %vm273_vm3, %v2639_v48  ;;  %v2642_v61 = vmul.f32 %v2617_v47, %v2546_v51  ;;  %v5926_v62 = vadd.f32 %v5677_v60, %v7005_v44  ;;  %v2476_v63 = vpop.f32.mrb[15].mxu0  ;;  %5693 = vmatmul.mubr.msk.f32.gmra.mrb[8].mxu1 %vm273_vm3, %v7080_v54  ;;  %v7210_v21 = vld [vmem:[#allocation7 + $0x30] sm:$0xff]  ;;  %v7214_v25 = vld [vmem:[#allocation7 + $0x38] sm:$0xff] }
 0x282   : > { %v2641_v1 = vmul.f32 %v2612_v50, %v2545_v59  ;;  %v5927_v2 = vadd.f32 %v7005_v44, %v2476_v63  ;;  %v2622_v44 = vpop.permute.xlu1 %2621  ;;  %v7169_v39 = vld [vmem:[#allocation6 + $0x58] sm:$0xff]  ;;  %v7218_v27 = vld [vmem:[#allocation7 + $0x40] sm:$0xff]  ;;  %v5067_v49 = vld [vmem:[%s7449_s3 + $0x28] sm:$0xff] }
 0x283   : > { %2658 = vst.msk [vmem:[#allocation5 + $0x79] sm:$0xff] %vm273_vm3, %v2642_v61  ;;  %2674 = vst.msk [vmem:[#allocation6 + $0x78] sm:$0xff] %vm273_vm3, %v2642_v61  ;;  %v2548_v4 = vmax.f32 %v5926_v62, 0.0  ;;  %v7094_v5 = vld [vmem:[#allocation5 + $0x50] sm:$0xff]  ;;  %v7096_v6 = vld [vmem:[#allocation5 + $0x58] sm:$0xff] }
 0x284   : > { %2690 = vst.msk [vmem:[#allocation7 + $0x77] sm:$0xff] %vm273_vm3, %v2642_v61  ;;  %2657 = vst.msk [vmem:[#allocation5 + $0x71] sm:$0xff] %vm273_vm3, %v2641_v1  ;;  %v2547_v10 = vmax.f32 %v5927_v2, 0.0  ;;  %5695 = vmatprep.mubr.msk.f32.mxu1 %vm273_vm3, %v7094_v5  ;;  %v7165_v38 = vld [vmem:[#allocation6 + $0x50] sm:$0xff]  ;;  %v7222_v34 = vld [vmem:[#allocation7 + $0x48] sm:$0xff] }
 0x285   : > { %2673 = vst.msk [vmem:[#allocation6 + $0x70] sm:$0xff] %vm273_vm3, %v2641_v1  ;;  %2689 = vst.msk [vmem:[#allocation7 + $0x6f] sm:$0xff] %vm273_vm3, %v2641_v1  ;;  %v2644_v11 = vmul.f32 %v2627_v7, %v2548_v4  ;;  %5696 = vmatmul.mubr.msk.f32.gmra.mrb[10].mxu1 %vm273_vm3, %v7096_v6  ;;  %v7226_v35 = vld [vmem:[#allocation7 + $0x50] sm:$0xff]  ;;  %v5085_v59 = vld [vmem:[%s7449_s3 + $0x38] sm:$0xff] }
 0x286   : > { %v2643_v12 = vmul.f32 %v2622_v44, %v2547_v10  ;;  %v7177_v41 = vld [vmem:[#allocation6 + $0x68] sm:$0xff]  ;;  %v5084_v60 = vld [vmem:[%s7449_s3 + $0x30] sm:$0xff]  ;;  %v5118_v63 = vld [vmem:[%s7449_s3 + $0x40] sm:$0xff] }
 0x287   : > { %2660 = vst.msk [vmem:[#allocation5 + $0x89] sm:$0xff] %vm273_vm3, %v2644_v11  ;;  %2676 = vst.msk [vmem:[#allocation6 + $0x88] sm:$0xff] %vm273_vm3, %v2644_v11  ;;  %v7108_v13 = vld [vmem:[#allocation5 + $0x60] sm:$0xff]  ;;  %v7110_v16 = vld [vmem:[#allocation5 + $0x68] sm:$0xff] }
 0x288   : > { %2692 = vst.msk [vmem:[#allocation7 + $0x87] sm:$0xff] %vm273_vm3, %v2644_v11  ;;  %2659 = vst.msk [vmem:[#allocation5 + $0x81] sm:$0xff] %vm273_vm3, %v2643_v12  ;;  %5698 = vmatprep.mubr.msk.f32.mxu1 %vm273_vm3, %v7108_v13  ;;  %v7173_v40 = vld [vmem:[#allocation6 + $0x60] sm:$0xff]  ;;  %v7230_v36 = vld [vmem:[#allocation7 + $0x58] sm:$0xff] }
 0x289   : > { %2675 = vst.msk [vmem:[#allocation6 + $0x80] sm:$0xff] %vm273_vm3, %v2643_v12  ;;  %2691 = vst.msk [vmem:[#allocation7 + $0x7f] sm:$0xff] %vm273_vm3, %v2643_v12  ;;  %5699 = vmatmul.mubr.msk.f32.gmra.mrb[12].mxu1 %vm273_vm3, %v7110_v16  ;;  %v7234_v45 = vld [vmem:[#allocation7 + $0x60] sm:$0xff]  ;;  %v4061_v1 = vld [vmem:[#allocation6 + $0x90] sm:$0xff] }
 0x28a   : > { %v7185_v58 = vld [vmem:[#allocation6 + $0x78] sm:$0xff] }
 0x28b   : > { %v7119_v3 = vld [vmem:[#allocation5 + $0x70] sm:$0xff]  ;;  %v7121_v8 = vld [vmem:[#allocation5 + $0x78] sm:$0xff] }
 0x28c   : > { %5701 = vmatprep.mubr.msk.f32.mxu1 %vm273_vm3, %v7119_v3  ;;  %v7181_v53 = vld [vmem:[#allocation6 + $0x70] sm:$0xff]  ;;  %v7238_v46 = vld [vmem:[#allocation7 + $0x68] sm:$0xff]  ;;  %v4062_v2 = vld [vmem:[#allocation6 + $0x98] sm:$0xff] }
 0x28d   : > { %5702 = vmatmul.mubr.msk.f32.gmra.mrb[14].mxu1 %vm273_vm3, %v7121_v8  ;;  %v7242_v47 = vld [vmem:[#allocation7 + $0x70] sm:$0xff] }
 0x28e   : > { %5706 = vmatprep.mubr.msk.f32.mxu1 %vm273_vm3, %v2926_v17  ;;  %v3413_v51 = vld [vmem:[#allocation6 + $0x88] sm:$0xff] }
 0x28f   : > { %v3817_v62 = vld [vmem:[#allocation7 + $0x88] sm:$0xff] }
 0x290   : > { %v7246_v48 = vld [vmem:[#allocation7 + $0x78] sm:$0xff]  ;;  %v3412_v50 = vld [vmem:[#allocation6 + $0x80] sm:$0xff] }
 0x291   : > { %5707 = vmatmul.mubr.msk.f32.vlgmr.msra.gmra.mrb[0].mxu1 %vm273_vm3, %v2927_v18  ;;  %v3816_v61 = vld [vmem:[#allocation7 + $0x80] sm:$0xff] }
 0x292   : > { %5731 = vmatpush3.msra.mxu1 %v6999_v0  ;;  %5709 = vmatprep.mubr.msk.f32.mxu1 %vm273_vm3, %v7132_v22  ;;  %v7149_v0 = vld [vmem:[#allocation6 + $0x30] sm:$0xff] }
 0x293   : > { %5756 = vmatprep.subr.mxu1 %v5034_v20 }
 0x295   : > { %5710 = vmatmul.mubr.msk.f32.gmra.mrb[2].mxu1 %vm273_vm3, %v7137_v23 }
 0x296   : > { %5712 = vmatprep.mubr.msk.f32.mxu1 %vm273_vm3, %v7141_v24 }
 0x299   : > { %5713 = vmatmul.mubr.msk.f32.gmra.mrb[4].mxu1 %vm273_vm3, %v7145_v26 }
 0x29a   : > { %5715 = vmatprep.mubr.msk.f32.mxu1 %vm273_vm3, %v7149_v0 }
 0x29d   : > { %5716 = vmatmul.mubr.msk.f32.gmra.mrb[6].mxu1 %vm273_vm3, %v7153_v28 }
 0x29e   : > { %5718 = vmatprep.mubr.msk.f32.mxu1 %vm273_vm3, %v7157_v32 }
 0x2a1   : > { %5719 = vmatmul.mubr.msk.f32.gmra.mrb[8].mxu1 %vm273_vm3, %v7161_v37 }
 0x2a2   : > { %5721 = vmatprep.mubr.msk.f32.mxu1 %vm273_vm3, %v7165_v38 }
 0x2a5   : > { %5722 = vmatmul.mubr.msk.f32.gmra.mrb[10].mxu1 %vm273_vm3, %v7169_v39 }
 0x2a6   : > { %5724 = vmatprep.mubr.msk.f32.mxu1 %vm273_vm3, %v7173_v40 }
 0x2a9   : > { %5725 = vmatmul.mubr.msk.f32.gmra.mrb[12].mxu1 %vm273_vm3, %v7177_v41 }
 0x2aa   : > { %5727 = vmatprep.mubr.msk.f32.mxu1 %vm273_vm3, %v7181_v53 }
 0x2ad   : > { %5728 = vmatmul.mubr.msk.f32.gmra.mrb[14].mxu1 %vm273_vm3, %v7185_v58 }
 0x2ae   : > { %5732 = vmatprep.mubr.msk.f32.mxu1 %vm273_vm3, %v3153_v55 }
 0x2b1   : > { %5733 = vmatmul.mubr.msk.f32.vlgmr.msra.gmra.mrb[0].mxu1 %vm273_vm3, %v3154_v42 }
 0x2b2   : > { %5757 = vmatpush3.msra.mxu1 %v5034_v20  ;;  %5735 = vmatprep.mubr.msk.f32.mxu1 %vm273_vm3, %v7194_v9 }
 0x2b3   : > { %5782 = vmatprep.subr.mxu1 %v5033_v43 }
 0x2b5   : > { %5736 = vmatmul.mubr.msk.f32.gmra.mrb[2].mxu1 %vm273_vm3, %v7198_v14 }
 0x2b6   : > { %5738 = vmatprep.mubr.msk.f32.mxu1 %vm273_vm3, %v7202_v15 }
 0x2b9   : > { %5739 = vmatmul.mubr.msk.f32.gmra.mrb[4].mxu1 %vm273_vm3, %v7206_v19 }
 0x2ba   : > { %5741 = vmatprep.mubr.msk.f32.mxu1 %vm273_vm3, %v7210_v21 }
 0x2bd   : > { %5742 = vmatmul.mubr.msk.f32.gmra.mrb[6].mxu1 %vm273_vm3, %v7214_v25 }
 0x2be   : > { %5744 = vmatprep.mubr.msk.f32.mxu1 %vm273_vm3, %v7218_v27 }
 0x2c1   : > { %5745 = vmatmul.mubr.msk.f32.gmra.mrb[8].mxu1 %vm273_vm3, %v7222_v34 }
 0x2c2   : > { %5747 = vmatprep.mubr.msk.f32.mxu1 %vm273_vm3, %v7226_v35 }
 0x2c5   : > { %5748 = vmatmul.mubr.msk.f32.gmra.mrb[10].mxu1 %vm273_vm3, %v7230_v36 }
 0x2c6   : > { %5750 = vmatprep.mubr.msk.f32.mxu1 %vm273_vm3, %v7234_v45 }
 0x2c9   : > { %5751 = vmatmul.mubr.msk.f32.gmra.mrb[12].mxu1 %vm273_vm3, %v7238_v46 }
 0x2ca   : > { %5753 = vmatprep.mubr.msk.f32.mxu1 %vm273_vm3, %v7242_v47 }
 0x2cd   : > { %5754 = vmatmul.mubr.msk.f32.gmra.mrb[14].mxu1 %vm273_vm3, %v7246_v48 }
 0x2ce   : > { %5758 = vmatprep.mubr.msk.f32.mxu1 %vm273_vm3, %v7132_v22 }
 0x2d1   : > { %5759 = vmatmul.mubr.msk.f32.vlgmr.msra.gmra.mrb[0].mxu1 %vm273_vm3, %v7137_v23 }
 0x2d2   : > { %5783 = vmatpush3.msra.mxu1 %v5033_v43  ;;  %5761 = vmatprep.mubr.msk.f32.mxu1 %vm273_vm3, %v7141_v24 }
 0x2d3   : > { %5808 = vmatprep.subr.mxu1 %v5067_v49 }
 0x2d5   : > { %5762 = vmatmul.mubr.msk.f32.gmra.mrb[2].mxu1 %vm273_vm3, %v7145_v26 }
 0x2d6   : > { %5764 = vmatprep.mubr.msk.f32.mxu1 %vm273_vm3, %v7149_v0 }
 0x2d9   : > { %5765 = vmatmul.mubr.msk.f32.gmra.mrb[4].mxu1 %vm273_vm3, %v7153_v28 }
 0x2da   : > { %5767 = vmatprep.mubr.msk.f32.mxu1 %vm273_vm3, %v7157_v32 }
 0x2dd   : > { %5768 = vmatmul.mubr.msk.f32.gmra.mrb[6].mxu1 %vm273_vm3, %v7161_v37 }
 0x2de   : > { %5770 = vmatprep.mubr.msk.f32.mxu1 %vm273_vm3, %v7165_v38 }
 0x2e1   : > { %5771 = vmatmul.mubr.msk.f32.gmra.mrb[8].mxu1 %vm273_vm3, %v7169_v39 }
 0x2e2   : > { %5773 = vmatprep.mubr.msk.f32.mxu1 %vm273_vm3, %v7173_v40 }
 0x2e5   : > { %5774 = vmatmul.mubr.msk.f32.gmra.mrb[10].mxu1 %vm273_vm3, %v7177_v41 }
 0x2e6   : > { %5776 = vmatprep.mubr.msk.f32.mxu1 %vm273_vm3, %v7181_v53 }
 0x2e9   : > { %5777 = vmatmul.mubr.msk.f32.gmra.mrb[12].mxu1 %vm273_vm3, %v7185_v58 }
 0x2ea   : > { %5779 = vmatprep.mubr.msk.f32.mxu1 %vm273_vm3, %v3412_v50 }
 0x2ed   : > { %5780 = vmatmul.mubr.msk.f32.gmra.mrb[14].mxu1 %vm273_vm3, %v3413_v51 }
 0x2ee   : > { %5784 = vmatprep.mubr.msk.f32.mxu1 %vm273_vm3, %v7030_v29  ;;  %v3394_v29 = vld [vmem:[#allocation5 + $0x80] sm:$0xff] }
 0x2f1   : > { %5785 = vmatmul.mubr.msk.f32.vlgmr.msra.gmra.mrb[0].mxu1 %vm273_vm3, %v7032_v31  ;;  %v3395_v31 = vld [vmem:[#allocation5 + $0x88] sm:$0xff] }
 0x2f2   : > { %5809 = vmatpush3.msra.mxu1 %v5067_v49  ;;  %5787 = vmatprep.mubr.msk.f32.mxu1 %vm273_vm3, %v7046_v56 }
 0x2f3   : > { %5834 = vmatprep.subr.mxu1 %v5085_v59 }
 0x2f5   : > { %5788 = vmatmul.mubr.msk.f32.gmra.mrb[2].mxu1 %vm273_vm3, %v7048_v57 }
 0x2f6   : > { %5790 = vmatprep.mubr.msk.f32.mxu1 %vm273_vm3, %v7062_v30 }
 0x2f9   : > { %5791 = vmatmul.mubr.msk.f32.gmra.mrb[4].mxu1 %vm273_vm3, %v7064_v33 }
 0x2fa   : > { %5793 = vmatprep.mubr.msk.f32.mxu1 %vm273_vm3, %v7078_v52 }
 0x2fd   : > { %5794 = vmatmul.mubr.msk.f32.gmra.mrb[6].mxu1 %vm273_vm3, %v7080_v54 }
 0x2fe   : > { %5796 = vmatprep.mubr.msk.f32.mxu1 %vm273_vm3, %v7094_v5 }
 0x301   : > { %5797 = vmatmul.mubr.msk.f32.gmra.mrb[8].mxu1 %vm273_vm3, %v7096_v6 }
 0x302   : > { %5799 = vmatprep.mubr.msk.f32.mxu1 %vm273_vm3, %v7108_v13 }
 0x305   : > { %5800 = vmatmul.mubr.msk.f32.gmra.mrb[10].mxu1 %vm273_vm3, %v7110_v16 }
 0x306   : > { %5802 = vmatprep.mubr.msk.f32.mxu1 %vm273_vm3, %v7119_v3 }
 0x309   : > { %5803 = vmatmul.mubr.msk.f32.gmra.mrb[12].mxu1 %vm273_vm3, %v7121_v8 }
 0x30a   : > { %5805 = vmatprep.mubr.msk.f32.mxu1 %vm273_vm3, %v3394_v29 }
 0x30d   : > { %5806 = vmatmul.mubr.msk.f32.gmra.mrb[14].mxu1 %vm273_vm3, %v3395_v31 }
 0x30e   : > { %5810 = vmatprep.mubr.msk.f32.mxu1 %vm273_vm3, %v7194_v9 }
 0x311   : > { %5811 = vmatmul.mubr.msk.f32.vlgmr.msra.gmra.mrb[0].mxu1 %vm273_vm3, %v7198_v14 }
 0x312   : > { %5835 = vmatpush3.msra.mxu1 %v5085_v59  ;;  %5813 = vmatprep.mubr.msk.f32.mxu1 %vm273_vm3, %v7202_v15 }
 0x313   : > { %5860 = vmatprep.subr.mxu1 %v5084_v60 }
 0x315   : > { %5814 = vmatmul.mubr.msk.f32.gmra.mrb[2].mxu1 %vm273_vm3, %v7206_v19 }
 0x316   : > { %5816 = vmatprep.mubr.msk.f32.mxu1 %vm273_vm3, %v7210_v21 }
 0x319   : > { %5817 = vmatmul.mubr.msk.f32.gmra.mrb[4].mxu1 %vm273_vm3, %v7214_v25 }
 0x31a   : > { %5819 = vmatprep.mubr.msk.f32.mxu1 %vm273_vm3, %v7218_v27 }
 0x31d   : > { %5820 = vmatmul.mubr.msk.f32.gmra.mrb[6].mxu1 %vm273_vm3, %v7222_v34 }
 0x31e   : > { %5822 = vmatprep.mubr.msk.f32.mxu1 %vm273_vm3, %v7226_v35 }
 0x321   : > { %5823 = vmatmul.mubr.msk.f32.gmra.mrb[8].mxu1 %vm273_vm3, %v7230_v36 }
 0x322   : > { %5825 = vmatprep.mubr.msk.f32.mxu1 %vm273_vm3, %v7234_v45 }
 0x325   : > { %5826 = vmatmul.mubr.msk.f32.gmra.mrb[10].mxu1 %vm273_vm3, %v7238_v46 }
 0x326   : > { %5828 = vmatprep.mubr.msk.f32.mxu1 %vm273_vm3, %v7242_v47 }
 0x329   : > { %5829 = vmatmul.mubr.msk.f32.gmra.mrb[12].mxu1 %vm273_vm3, %v7246_v48 }
 0x32a   : > { %5831 = vmatprep.mubr.msk.f32.mxu1 %vm273_vm3, %v3816_v61 }
 0x32d   : > { %5832 = vmatmul.mubr.msk.f32.gmra.mrb[14].mxu1 %vm273_vm3, %v3817_v62 }
 0x32e   : > { %5836 = vmatprep.mubr.msk.f32.mxu1 %vm273_vm3, %v7141_v24 }
 0x331   : > { %5837 = vmatmul.mubr.msk.f32.vlgmr.msra.gmra.mrb[0].mxu1 %vm273_vm3, %v7145_v26 }
 0x332   : > { %5861 = vmatpush3.msra.mxu1 %v5084_v60  ;;  %5839 = vmatprep.mubr.msk.f32.mxu1 %vm273_vm3, %v7149_v0 }
 0x333   : > { %5886 = vmatprep.subr.mxu1 %v5118_v63 }
 0x335   : > { %5840 = vmatmul.mubr.msk.f32.gmra.mrb[2].mxu1 %vm273_vm3, %v7153_v28 }
 0x336   : > { %5842 = vmatprep.mubr.msk.f32.mxu1 %vm273_vm3, %v7157_v32 }
 0x339   : > { %5843 = vmatmul.mubr.msk.f32.gmra.mrb[4].mxu1 %vm273_vm3, %v7161_v37 }
 0x33a   : > { %5845 = vmatprep.mubr.msk.f32.mxu1 %vm273_vm3, %v7165_v38 }
 0x33d   : > { %5846 = vmatmul.mubr.msk.f32.gmra.mrb[6].mxu1 %vm273_vm3, %v7169_v39 }
 0x33e   : > { %5848 = vmatprep.mubr.msk.f32.mxu1 %vm273_vm3, %v7173_v40 }
 0x341   : > { %5849 = vmatmul.mubr.msk.f32.gmra.mrb[8].mxu1 %vm273_vm3, %v7177_v41 }
 0x342   : > { %5851 = vmatprep.mubr.msk.f32.mxu1 %vm273_vm3, %v7181_v53 }
 0x345   : > { %5852 = vmatmul.mubr.msk.f32.gmra.mrb[10].mxu1 %vm273_vm3, %v7185_v58 }
 0x346   : > { %5854 = vmatprep.mubr.msk.f32.mxu1 %vm273_vm3, %v3412_v50 }
 0x349   : > { %5855 = vmatmul.mubr.msk.f32.gmra.mrb[12].mxu1 %vm273_vm3, %v3413_v51 }
 0x34a   : > { %5857 = vmatprep.mubr.msk.f32.mxu1 %vm273_vm3, %v4061_v1 }
 0x34d   : > { %5858 = vmatmul.mubr.msk.f32.gmra.mrb[14].mxu1 %vm273_vm3, %v4062_v2 }
 0x34e   : > { %5862 = vmatprep.mubr.msk.f32.mxu1 %vm273_vm3, %v7046_v56  ;;  %v4043_v56 = vld [vmem:[#allocation5 + $0x90] sm:$0xff] }
 0x351   : > { %5863 = vmatmul.mubr.msk.f32.vlgmr.msra.gmra.mrb[0].mxu1 %vm273_vm3, %v7048_v57  ;;  %v4044_v57 = vld [vmem:[#allocation5 + $0x98] sm:$0xff] }
 0x352   : > { %5887 = vmatpush3.msra.mxu1 %v5118_v63  ;;  %5865 = vmatprep.mubr.msk.f32.mxu1 %vm273_vm3, %v7062_v30  ;;  %v4465_v30 = vld [vmem:[#allocation7 + $0x90] sm:$0xff] }
 0x355   : > { %5866 = vmatmul.mubr.msk.f32.gmra.mrb[2].mxu1 %vm273_vm3, %v7064_v33  ;;  %v4466_v33 = vld [vmem:[#allocation7 + $0x98] sm:$0xff] }
 0x356   : > { %5868 = vmatprep.mubr.msk.f32.mxu1 %vm273_vm3, %v7078_v52  ;;  %v4982_v52 = vld [vmem:[%s7450_s4] ss:$0 sm:$0xff] }
 0x359   : > { %5869 = vmatmul.mubr.msk.f32.gmra.mrb[4].mxu1 %vm273_vm3, %v7080_v54 }
 0x35a   : > { %5871 = vmatprep.mubr.msk.f32.mxu1 %vm273_vm3, %v7094_v5 }
 0x35d   : > { %5872 = vmatmul.mubr.msk.f32.gmra.mrb[6].mxu1 %vm273_vm3, %v7096_v6 }
 0x35e   : > { %5874 = vmatprep.mubr.msk.f32.mxu1 %vm273_vm3, %v7108_v13 }
 0x361   : > { %5875 = vmatmul.mubr.msk.f32.gmra.mrb[8].mxu1 %vm273_vm3, %v7110_v16 }
 0x362   : > { %5877 = vmatprep.mubr.msk.f32.mxu1 %vm273_vm3, %v7119_v3 }
 0x365   : > { %5878 = vmatmul.mubr.msk.f32.gmra.mrb[10].mxu1 %vm273_vm3, %v7121_v8 }
 0x366   : > { %5880 = vmatprep.mubr.msk.f32.mxu1 %vm273_vm3, %v3394_v29 }
 0x369   : > { %5881 = vmatmul.mubr.msk.f32.gmra.mrb[12].mxu1 %vm273_vm3, %v3395_v31 }
 0x36a   : > { %5883 = vmatprep.mubr.msk.f32.mxu1 %vm273_vm3, %v4043_v56 }
 0x36d   : > { %5884 = vmatmul.mubr.msk.f32.gmra.mrb[14].mxu1 %vm273_vm3, %v4044_v57 }
 0x36e   : > { %5888 = vmatprep.mubr.msk.f32.mxu1 %vm273_vm3, %v7202_v15 }
 0x371   : > { %5889 = vmatmul.mubr.msk.f32.vlgmr.msra.gmra.mrb[0].mxu1 %vm273_vm3, %v7206_v19 }
 0x372   : > { %5891 = vmatprep.mubr.msk.f32.mxu1 %vm273_vm3, %v7210_v21 }
 0x375   : > { %5892 = vmatmul.mubr.msk.f32.gmra.mrb[2].mxu1 %vm273_vm3, %v7214_v25 }
 0x376   : > { %5894 = vmatprep.mubr.msk.f32.mxu1 %vm273_vm3, %v7218_v27 }
 0x379   : > { %5895 = vmatmul.mubr.msk.f32.gmra.mrb[4].mxu1 %vm273_vm3, %v7222_v34 }
 0x37a   : > { %5897 = vmatprep.mubr.msk.f32.mxu1 %vm273_vm3, %v7226_v35 }
 0x37d   : > { %5898 = vmatmul.mubr.msk.f32.gmra.mrb[6].mxu1 %vm273_vm3, %v7230_v36 }
 0x37e   : > { %5900 = vmatprep.mubr.msk.f32.mxu1 %vm273_vm3, %v7234_v45 }
 0x381   : > { %5901 = vmatmul.mubr.msk.f32.gmra.mrb[8].mxu1 %vm273_vm3, %v7238_v46 }
 0x382   : > { %5903 = vmatprep.mubr.msk.f32.mxu1 %vm273_vm3, %v7242_v47 }
 0x385   : > { %5904 = vmatmul.mubr.msk.f32.gmra.mrb[10].mxu1 %vm273_vm3, %v7246_v48 }
 0x386   : > { %5906 = vmatprep.mubr.msk.f32.mxu1 %vm273_vm3, %v3816_v61 }
 0x389   : > { %5907 = vmatmul.mubr.msk.f32.gmra.mrb[12].mxu1 %vm273_vm3, %v3817_v62 }
 0x38a   : > { %5909 = vmatprep.mubr.msk.f32.mxu1 %vm273_vm3, %v4465_v30 }
 0x38d   : > { %5910 = vmatmul.mubr.msk.f32.gmra.mrb[14].mxu1 %vm273_vm3, %v4466_v33 }
 0x444   : > { %v5890_v54 = vpop.f32.mrb[0].mxu1 }
 0x445   : > { %v4583_v4 = vpop.f32.mrb[1].mxu1  ;;  %v5928_v6 = vadd.f32 %v5890_v54, %v4982_v52 }
 0x446   : > { %v5929_v5 = vadd.f32 %v4982_v52, %v4583_v4 }
 0x447   : > { %v4711_v11 = vmax.f32 %v5928_v6, 0.0 }
 0x448   : > { %v4710_v7 = vmax.f32 %v5929_v5, 0.0  ;;  %v5893_v10 = vpop.f32.mrb[2].mxu1 }
 0x449   : > { %v4593_v44 = vpop.f32.mrb[3].mxu1  ;;  %v5930_v3 = vadd.f32 %v5893_v10, %v4982_v52 }
 0x44a   : > { %4726 = vxpose.xlu1.b32.start [1/16] (narrow) %v4710_v7, 8  ;;  %v5931_v12 = vadd.f32 %v4982_v52, %v4593_v44 }
 0x44b   : > { %v4713_v20 = vmax.f32 %v5930_v3, 0.0 }
 0x44c   : > { %v5896_v13 = vpop.f32.mrb[4].mxu1  ;;  %v4712_v8 = vmax.f32 %v5931_v12, 0.0 }
 0x44d   : > { %v4603_v16 = vpop.f32.mrb[5].mxu1  ;;  %v5932_v26 = vadd.f32 %v5896_v13, %v4982_v52 }
 0x44e   : > { %4727 = vxpose.xlu1.b32.cont [2/16] (narrow) %v4711_v11, 8  ;;  %v5933_v22 = vadd.f32 %v4982_v52, %v4603_v16 }
 0x44f   : > { %v4715_v37 = vmax.f32 %v5932_v26, 0.0 }
 0x450   : > { %v5899_v17 = vpop.f32.mrb[6].mxu1  ;;  %v4714_v0 = vmax.f32 %v5933_v22, 0.0 }
 0x451   : > { %v4613_v18 = vpop.f32.mrb[7].mxu1  ;;  %v5934_v41 = vadd.f32 %v5899_v17, %v4982_v52 }
 0x452   : > { %4728 = vxpose.xlu1.b32.cont [3/16] (narrow) %v4712_v8, 8  ;;  %v5935_v38 = vadd.f32 %v4982_v52, %v4613_v18 }
 0x453   : > { %v4717_v42 = vmax.f32 %v5934_v41, 0.0 }
 0x454   : > { %v5902_v23 = vpop.f32.mrb[8].mxu1  ;;  %v4716_v53 = vmax.f32 %v5935_v38, 0.0 }
 0x455   : > { %v4623_v24 = vpop.f32.mrb[9].mxu1  ;;  %v5936_v9 = vadd.f32 %v5902_v23, %v4982_v52 }
 0x456   : > { %4729 = vxpose.xlu1.b32.cont [4/16] (narrow) %v4713_v20, 8  ;;  %v5937_v43 = vadd.f32 %v4982_v52, %v4623_v24 }
 0x457   : > { %v4719_v15 = vmax.f32 %v5936_v9, 0.0 }
 0x458   : > { %v5905_v28 = vpop.f32.mrb[10].mxu1  ;;  %v4718_v14 = vmax.f32 %v5937_v43, 0.0 }
 0x459   : > { %v4633_v32 = vpop.f32.mrb[11].mxu1  ;;  %v5938_v21 = vadd.f32 %v5905_v28, %v4982_v52 }
 0x45a   : > { %4730 = vxpose.xlu1.b32.cont [5/16] (narrow) %v4714_v0, 8  ;;  %v5939_v19 = vadd.f32 %v4982_v52, %v4633_v32 }
 0x45b   : > { %v4721_v27 = vmax.f32 %v5938_v21, 0.0 }
 0x45c   : > { %v5908_v39 = vpop.f32.mrb[12].mxu1  ;;  %v4720_v25 = vmax.f32 %v5939_v19, 0.0 }
 0x45d   : > { %v4643_v40 = vpop.f32.mrb[13].mxu1  ;;  %v5940_v35 = vadd.f32 %v5908_v39, %v4982_v52 }
 0x45e   : > { %4731 = vxpose.xlu1.b32.cont [6/16] (narrow) %v4715_v37, 8  ;;  %v5941_v34 = vadd.f32 %v4982_v52, %v4643_v40 }
 0x45f   : > { %v4723_v45 = vmax.f32 %v5940_v35, 0.0 }
 0x460   : > { %v5911_v55 = vpop.f32.mrb[14].mxu1  ;;  %v4722_v36 = vmax.f32 %v5941_v34, 0.0 }
 0x461   : > { %v4653_v58 = vpop.f32.mrb[15].mxu1  ;;  %v5942_v47 = vadd.f32 %v5911_v55, %v4982_v52 }
 0x462   : > { %4732 = vxpose.xlu1.b32.cont [7/16] (narrow) %v4716_v53, 8  ;;  %v5943_v46 = vadd.f32 %v4982_v52, %v4653_v58 }
 0x463   : > { %v4725_v49 = vmax.f32 %v5942_v47, 0.0 }
 0x464   : > { %v4724_v48 = vmax.f32 %v5943_v46, 0.0 }
 0x466   : > { %4733 = vxpose.xlu1.b32.cont [8/16] (narrow) %v4717_v42, 8 }
 0x46a   : > { %4734 = vxpose.xlu1.b32.cont [9/16] (narrow) %v4718_v14, 8 }
 0x46e   : > { %4735 = vxpose.xlu1.b32.cont [10/16] (narrow) %v4719_v15, 8 }
 0x472   : > { %4736 = vxpose.xlu1.b32.cont [11/16] (narrow) %v4720_v25, 8 }
 0x476   : > { %4737 = vxpose.xlu1.b32.cont [12/16] (narrow) %v4721_v27, 8 }
 0x47a   : > { %4738 = vxpose.xlu1.b32.cont [13/16] (narrow) %v4722_v36, 8 }
 0x47e   : > { %4739 = vxpose.xlu1.b32.cont [14/16] (narrow) %v4723_v45, 8 }
 0x482   : > { %4740 = vxpose.xlu1.b32.cont [15/16] (narrow) %v4724_v48, 8 }
 0x486   : > { %4741 = vxpose.xlu1.b32.end [16/16] (narrow) %v4725_v49, 8 }
 0x4ca   : > { %v4742_v50 = vpop.trf.xlu1 }
 0x4cb   : > { %4758 = vst [vmem:[%s249_s14] sm:$0xff] %v4742_v50 }
 0x4cc PF: > { %s16_s21 = sadd.s32 1, %s6219_s21  }
 0x4cd   : > { %p13_p4 = scmp.ge.s32.totalorder %s16_s21, 4  }
 0x4cf   :  { %15 = sbr.rel (!%p13_p4) target bundleno = 1 (0x1), region = 90 }

</bundles_post_ra>
